<compile_context>
chip_gen: v7x
topology: tpu7x:2x2x1
jax: 0.10.0
libtpu: 0.0.40
codegen_flags: <defaults>
</compile_context>

<pallas_src>
import functools
import math

import jax
import jax.numpy as jnp
import numpy as np
from jax.experimental import pallas as pl
from jax.experimental.pallas import tpu as pltpu


def _round_up(x, m):
    return ((x + m - 1) // m) * m


def _layernorm_f32(x, a, b, eps=1e-6):
    # torch LayerNorm as written in the reference: unbiased std, eps added to std.
    d = x.shape[-1]
    mean = jnp.mean(x, axis=-1, keepdims=True)
    xc = x - mean
    var = jnp.sum(xc * xc, axis=-1, keepdims=True) * (1.0 / (d - 1))
    # Exact reciprocal here (not approx): LN feeds two matmul chains, so the
    # approximate EUP reciprocal error would compound (review correctness note).
    return a * (xc / (jnp.sqrt(var) + eps)) + b


def transformer_block_kernel(
    # inputs
    x_ref,        # (1, S_pad, D) f32  full sequence for this batch element
    mask_ref,     # (1, TQ, TK)   int8 mask tile for (q-rows, kv-cols)
    wqkv_ref,     # (D, 3D)  bf16  fused Q|K|V projection
    bqkv_ref,     # (1, 3D)  f32
    wo_ref,       # (D, D)   bf16  output projection (full depth)
    bo_ref,       # (1, D)   f32
    ln1a_ref, ln1b_ref, ln2a_ref, ln2b_ref,   # (1, D) f32
    w1_ref,       # (D, F)   bf16
    b1_ref,       # (1, F)   f32
    w2_ref,       # (F, D)   bf16
    b2_ref,       # (1, D)   f32
    # outputs
    o_ref,        # (1, TQ, D)
    # scratch (persist across q-tile / kv-tile axes)
    q_scr, k_scr, v_scr,      # (H, S_pad, dk) bf16 each
    m_scr, l_scr,             # (H, TQ, 1) f32 each (online-softmax running max / sum)
    acc_scr,                  # (H, TQ, dk) f32    (online-softmax accumulator)
    *, num_heads: int, block_q: int, block_k: int,
):
    D = x_ref.shape[2]
    dk = D // num_heads
    scale = 1.0 / math.sqrt(dk)
    qi = pl.program_id(1)
    kv = pl.program_id(2)
    num_kv = pl.num_programs(2)

    # ---- once per batch element: LN1 + fused QKV projection over the full
    #      sequence, cached head-split (Q pre-scaled) in bf16 VMEM scratch. ----
    @pl.when((qi == 0) & (kv == 0))
    def _():
        x_full = x_ref[0]                                             # [S_pad, D] f32
        xn = _layernorm_f32(x_full, ln1a_ref[...], ln1b_ref[...])
        qkv = jnp.dot(xn.astype(jnp.bfloat16), wqkv_ref[...],
                      preferred_element_type=jnp.float32) + bqkv_ref[...]
        for h in range(num_heads):
            lo = h * dk
            q_scr[h] = (qkv[:, lo:lo + dk] * scale).astype(jnp.bfloat16)
            k_scr[h] = qkv[:, D + lo:D + lo + dk].astype(jnp.bfloat16)
            v_scr[h] = qkv[:, 2 * D + lo:2 * D + lo + dk].astype(jnp.bfloat16)

    # ---- once per q-tile: reset the online-softmax state ----
    @pl.when(kv == 0)
    def _():
        m_scr[...] = jnp.full_like(m_scr, -jnp.inf)
        l_scr[...] = jnp.zeros_like(l_scr)
        acc_scr[...] = jnp.zeros_like(acc_scr)

    # ---- flash step for this (q-tile, kv-tile): scores are only [H, TQ, TK] ----
    row0 = pl.multiple_of(qi * block_q, block_q)
    col0 = pl.multiple_of(kv * block_k, block_k)
    q = q_scr[:, pl.ds(row0, block_q), :]                             # [H, TQ, dk] bf16
    k = k_scr[:, pl.ds(col0, block_k), :]                             # [H, TK, dk] bf16
    v = v_scr[:, pl.ds(col0, block_k), :]                             # [H, TK, dk] bf16

    s = jnp.einsum('hqd,hkd->hqk', q, k,
                   preferred_element_type=jnp.float32)                # [H, TQ, TK] f32

    m_tile = mask_ref[0].astype(jnp.float32)                          # [TQ, TK]
    bias = jnp.where(m_tile == 0.0, -1e9, 0.0)                        # shared by all heads
    s = s + bias[None, :, :]

    m_prev = m_scr[...]                                               # [H, TQ, 1]
    m_new = jnp.maximum(m_prev, jnp.max(s, axis=-1, keepdims=True))
    alpha = jnp.exp(m_prev - m_new)
    p = jnp.exp(s - m_new)                                            # [H, TQ, TK] f32
    l_scr[...] = alpha * l_scr[...] + jnp.sum(p, axis=-1, keepdims=True)
    acc_scr[...] = alpha * acc_scr[...] + jnp.einsum(
        'hqk,hkd->hqd', p.astype(jnp.bfloat16), v,
        preferred_element_type=jnp.float32)                           # [H, TQ, dk]
    m_scr[...] = m_new

    # ---- last kv tile: finalize attention, then residual + LN2 + FFN ----
    @pl.when(kv == num_kv - 1)
    def _():
        inv_l = pl.reciprocal(l_scr[...], approx=True)                # [H, TQ, 1] (EUP)
        # concat_h(ctx_h) -> [TQ, D]; single full-depth output projection on the MXU.
        ctx = jnp.concatenate(
            [(acc_scr[h] * inv_l[h]).astype(jnp.bfloat16) for h in range(num_heads)],
            axis=-1)                                                  # [TQ, D] bf16
        attn = jnp.dot(ctx, wo_ref[...],
                       preferred_element_type=jnp.float32) + bo_ref[...]

        x_tile = x_ref[0, pl.ds(row0, block_q), :]                    # [TQ, D] f32
        x1 = x_tile + attn   # dropout == identity at inference
        # TODO(synk): training-mode dropout (p > 0) not implemented; would use pltpu.prng_*.

        xn2 = _layernorm_f32(x1, ln2a_ref[...], ln2b_ref[...])
        h1 = jnp.dot(xn2.astype(jnp.bfloat16), w1_ref[...],
                     preferred_element_type=jnp.float32) + b1_ref[...]
        h1 = jnp.maximum(h1, 0.0)
        ff = jnp.dot(h1.astype(jnp.bfloat16), w2_ref[...],
                     preferred_element_type=jnp.float32) + b2_ref[...]

        o_ref[0] = (x1 + ff).astype(o_ref.dtype)


def _pick_block_k(s_pad, tq):
    for cand in (512, 256, 128):
        if s_pad % cand == 0:
            return cand
    return tq  # s_pad is a multiple of tq by construction


def _padded_bytes(shape, dtype):
    """Rough VMEM footprint of one buffer with (8, 128) tile padding."""
    shape = tuple(int(d) for d in shape)
    itemsize = np.dtype(dtype).itemsize
    if len(shape) == 0:
        return itemsize
    if len(shape) == 1:
        return _round_up(shape[0], 128) * itemsize
    lane = _round_up(shape[-1], 128)
    sub = _round_up(shape[-2], 8)
    lead = 1
    for d in shape[:-2]:
        lead *= d
    return lead * sub * lane * itemsize


def transformer_block(x, mask, params, *, num_heads, block_q=128, block_k=None):
    B, S, D = x.shape
    assert D % num_heads == 0
    dk = D // num_heads

    # Query-row tile (TQ): default 128 (v5e-friendly).  Ragged S is padded up to a
    # multiple of TQ instead of degenerating to one whole-sequence tile.
    tq = min(block_q, S)
    S_pad = _round_up(S, tq)
    if block_k is not None and block_k <= S_pad and S_pad % block_k == 0:
        tk = block_k
    else:
        tk = _pick_block_k(S_pad, tq)
    n_q = S_pad // tq
    n_kv = S_pad // tk

    if S_pad != S:
        x_in = jnp.pad(x, ((0, 0), (0, S_pad - S), (0, 0)))
        mask_in = jnp.pad(mask, ((0, 0), (0, S_pad - S), (0, S_pad - S)))
    else:
        x_in, mask_in = x, mask
    # int8 mask: 4x less HBM traffic / VMEM than f32 [B, S, S].
    mask_i8 = (mask_in != 0).astype(jnp.int8)

    bf16 = jnp.bfloat16
    # Fused Q|K|V [D, 3D] matmul; ship matmul weights in bf16 (halves HBM traffic and
    # VMEM residency, native MXU rate); accumulation stays f32 in-kernel.
    wqkv = jnp.concatenate([params["wq"], params["wk"], params["wv"]], axis=1).astype(bf16)
    bqkv = jnp.concatenate([params["bq"], params["bk"], params["bv"]], axis=1)
    wo = params["wo"].astype(bf16)
    w1 = params["w1"].astype(bf16)
    w2 = params["w2"].astype(bf16)

    weights = [wqkv, bqkv, wo, params["bo"],
               params["ln1_a"], params["ln1_b"], params["ln2_a"], params["ln2_b"],
               w1, params["b1"], w2, params["b2"]]

    # Constant index maps -> fetched once and kept resident across all grid steps.
    def const_spec(arr):
        n = arr.ndim
        return pl.BlockSpec(arr.shape, lambda b, qi, kvi: (0,) * n)

    in_specs = [
        pl.BlockSpec((1, S_pad, D), lambda b, qi, kvi: (b, 0, 0)),    # x, per-batch resident
        pl.BlockSpec((1, tq, tk), lambda b, qi, kvi: (b, qi, kvi)),   # int8 mask tile
    ] + [const_spec(w) for w in weights]

    scratch_shapes = [
        pltpu.VMEM((num_heads, S_pad, dk), bf16),      # cached Q (pre-scaled)
        pltpu.VMEM((num_heads, S_pad, dk), bf16),      # cached K
        pltpu.VMEM((num_heads, S_pad, dk), bf16),      # cached V
        pltpu.VMEM((num_heads, tq, 1), jnp.float32),   # running max
        pltpu.VMEM((num_heads, tq, 1), jnp.float32),   # running sum
        pltpu.VMEM((num_heads, tq, dk), jnp.float32),  # flash accumulator
    ]

    # ---- derived VMEM budget: footprint (with default double-buffering) + margin,
    #      capped below the physical VMEM of this chip generation. ----
    est = 2 * _padded_bytes((1, S_pad, D), x.dtype)        # x block
    est += 2 * _padded_bytes((1, tq, tk), jnp.int8)        # mask tile
    est += 2 * _padded_bytes((1, tq, D), x.dtype)          # output tile
    for w in weights:
        est += 2 * _padded_bytes(w.shape, w.dtype)
    est += 3 * _padded_bytes((num_heads, S_pad, dk), bf16)
    est += 2 * _padded_bytes((num_heads, tq, 1), jnp.float32)
    est += _padded_bytes((num_heads, tq, dk), jnp.float32)
    est = int(est * 1.25) + (4 << 20)
    try:
        phys = pltpu.get_tpu_info().vmem_capacity_bytes
    except Exception:
        phys = 64 << 20   # conservative fallback (v7x per-TensorCore size)
    vmem_limit = int(min(max(est, 32 << 20), min(phys - (8 << 20), 100 << 20)))

    kernel = functools.partial(transformer_block_kernel,
                               num_heads=num_heads, block_q=tq, block_k=tk)

    out = pl.pallas_call(
        kernel,
        out_shape=jax.ShapeDtypeStruct((B, S_pad, D), x.dtype),
        grid_spec=pltpu.PrefetchScalarGridSpec(
            num_scalar_prefetch=0,
            grid=(B, n_q, n_kv),
            in_specs=in_specs,
            out_specs=pl.BlockSpec((1, tq, D), lambda b, qi, kvi: (b, qi, 0)),
            scratch_shapes=scratch_shapes,
        ),
        compiler_params=pltpu.CompilerParams(
            # Batch axis can split across TensorCores; the q/kv axes are "arbitrary"
            # because they reuse scratch filled at (qi==0, kv==0) / accumulate over kv.
            dimension_semantics=("parallel", "arbitrary", "arbitrary"),
            vmem_limit_bytes=vmem_limit,
        ),
    )(x_in, mask_i8, *weights)

    return out[:, :S, :] if S_pad != S else out


def make_params(key, d_model, d_ff):
    ks = jax.random.split(key, 6)
    init = lambda k, shape: (0.02 * jax.random.normal(k, shape)).astype(jnp.float32)
    return {
        "wq": init(ks[0], (d_model, d_model)), "bq": jnp.zeros((1, d_model), jnp.float32),
        "wk": init(ks[1], (d_model, d_model)), "bk": jnp.zeros((1, d_model), jnp.float32),
        "wv": init(ks[2], (d_model, d_model)), "bv": jnp.zeros((1, d_model), jnp.float32),
        "wo": init(ks[3], (d_model, d_model)), "bo": jnp.zeros((1, d_model), jnp.float32),
        "ln1_a": jnp.ones((1, d_model), jnp.float32), "ln1_b": jnp.zeros((1, d_model), jnp.float32),
        "ln2_a": jnp.ones((1, d_model), jnp.float32), "ln2_b": jnp.zeros((1, d_model), jnp.float32),
        "w1": init(ks[4], (d_model, d_ff)), "b1": jnp.zeros((1, d_ff), jnp.float32),
        "w2": init(ks[5], (d_ff, d_model)), "b2": jnp.zeros((1, d_model), jnp.float32),
    }


def reference_block(x, mask, params, num_heads):
    """Pure-JAX f32 reference matching the PyTorch module semantics."""
    def ln(t, a, b, eps=1e-6):
        mean = t.mean(-1, keepdims=True)
        var = ((t - mean) ** 2).sum(-1, keepdims=True) / (t.shape[-1] - 1)
        return a * (t - mean) / (jnp.sqrt(var) + eps) + b

    B, S, D = x.shape
    dk = D // num_heads
    xn = ln(x, params["ln1_a"], params["ln1_b"])
    q = xn @ params["wq"] + params["bq"]
    k = xn @ params["wk"] + params["bk"]
    v = xn @ params["wv"] + params["bv"]
    split = lambda t: t.reshape(B, S, num_heads, dk).transpose(0, 2, 1, 3)
    qh, kh, vh = split(q), split(k), split(v)
    s = jnp.einsum('bhqd,bhkd->bhqk', qh, kh) / math.sqrt(dk)
    s = jnp.where(mask[:, None] == 0, -1e9, s)
    p = jax.nn.softmax(s, axis=-1)
    ctx = jnp.einsum('bhqk,bhkd->bhqd', p, vh).transpose(0, 2, 1, 3).reshape(B, S, D)
    x1 = x + (ctx @ params["wo"] + params["bo"])
    xn2 = ln(x1, params["ln2_a"], params["ln2_b"])
    h1 = jax.nn.relu(xn2 @ params["w1"] + params["b1"])
    return x1 + (h1 @ params["w2"] + params["b2"])


if __name__ == "__main__":
    def run_case(B, S, D, H, FF, block_q, block_k=None):
        key = jax.random.PRNGKey(0)
        kx, kp = jax.random.split(key)
        x = jax.random.normal(kx, (B, S, D), dtype=jnp.float32)
        # causal mask: 1 = attend, 0 = masked (compared against 0 like torch masked_fill(mask == 0))
        mask = jnp.broadcast_to(jnp.tril(jnp.ones((S, S), jnp.float32)), (B, S, S))
        params = make_params(kp, D, FF)

        out = transformer_block(x, mask, params, num_heads=H,
                                block_q=block_q, block_k=block_k)
        jax.block_until_ready(out)
        assert out.shape == (B, S, D)

        ref = reference_block(x, mask, params, H)
        err = float(jnp.max(jnp.abs(out - ref)))
        assert err < 5e-2, f"max abs err vs reference: {err}"

    # Small shape consistent with the module (single-tile path).
    run_case(B=2, S=8, D=32, H=4, FF=64, block_q=128)
    # Multi-tile path: ragged S padded to 256, 2 q-tiles x 2 kv-tiles (flash loop).
    run_case(B=2, S=200, D=64, H=4, FF=128, block_q=128, block_k=128)

    print("KERNEL_OK")
</pallas_src>

<mosaic_0001>
module attributes {stable_mosaic.version = 11 : i64} {
  func.func @transformer_block_kernel(%arg0: i32, %arg1: i32, %arg2: i32, %arg3: memref<1x8x32xf32, #tpu.memory_space<vmem>>, %arg4: memref<1x8x8xi8, #tpu.memory_space<vmem>>, %arg5: memref<32x96xbf16, #tpu.memory_space<vmem>>, %arg6: memref<1x96xf32, #tpu.memory_space<vmem>>, %arg7: memref<32x32xbf16, #tpu.memory_space<vmem>>, %arg8: memref<1x32xf32, #tpu.memory_space<vmem>>, %arg9: memref<1x32xf32, #tpu.memory_space<vmem>>, %arg10: memref<1x32xf32, #tpu.memory_space<vmem>>, %arg11: memref<1x32xf32, #tpu.memory_space<vmem>>, %arg12: memref<1x32xf32, #tpu.memory_space<vmem>>, %arg13: memref<32x64xbf16, #tpu.memory_space<vmem>>, %arg14: memref<1x64xf32, #tpu.memory_space<vmem>>, %arg15: memref<64x32xbf16, #tpu.memory_space<vmem>>, %arg16: memref<1x32xf32, #tpu.memory_space<vmem>>, %arg17: memref<1x8x32xf32, #tpu.memory_space<vmem>>, %arg18: memref<4x8x8xbf16, #tpu.memory_space<vmem>>, %arg19: memref<4x8x8xbf16, #tpu.memory_space<vmem>>, %arg20: memref<4x8x8xbf16, #tpu.memory_space<vmem>>, %arg21: memref<4x8x1xf32, #tpu.memory_space<vmem>>, %arg22: memref<4x8x1xf32, #tpu.memory_space<vmem>>, %arg23: memref<4x8x8xf32, #tpu.memory_space<vmem>>) attributes {dimension_semantics = [#tpu.dimension_semantics<parallel>, #tpu.dimension_semantics<arbitrary>, #tpu.dimension_semantics<arbitrary>], iteration_bounds = array<i64: 2, 1, 1>, scalar_prefetch = 0 : i64, scratch_operands = 6 : i64, tpu.core_type = #tpu.core_type<tc>, window_params = [{transform_indices = @transform_0, window_bounds = array<i64: 1, 8, 32>}, {transform_indices = @transform_1, window_bounds = array<i64: 1, 8, 8>}, {pipeline_mode = #tpu.pipeline_mode<synchronous>, transform_indices = @transform_2, window_bounds = array<i64: 32, 96>}, {pipeline_mode = #tpu.pipeline_mode<synchronous>, transform_indices = @transform_3, window_bounds = array<i64: 1, 96>}, {pipeline_mode = #tpu.pipeline_mode<synchronous>, transform_indices = @transform_4, window_bounds = array<i64: 32, 32>}, {pipeline_mode = #tpu.pipeline_mode<synchronous>, transform_indices = @transform_5, window_bounds = array<i64: 1, 32>}, {pipeline_mode = #tpu.pipeline_mode<synchronous>, transform_indices = @transform_6, window_bounds = array<i64: 1, 32>}, {pipeline_mode = #tpu.pipeline_mode<synchronous>, transform_indices = @transform_7, window_bounds = array<i64: 1, 32>}, {pipeline_mode = #tpu.pipeline_mode<synchronous>, transform_indices = @transform_8, window_bounds = array<i64: 1, 32>}, {pipeline_mode = #tpu.pipeline_mode<synchronous>, transform_indices = @transform_9, window_bounds = array<i64: 1, 32>}, {pipeline_mode = #tpu.pipeline_mode<synchronous>, transform_indices = @transform_10, window_bounds = array<i64: 32, 64>}, {pipeline_mode = #tpu.pipeline_mode<synchronous>, transform_indices = @transform_11, window_bounds = array<i64: 1, 64>}, {pipeline_mode = #tpu.pipeline_mode<synchronous>, transform_indices = @transform_12, window_bounds = array<i64: 64, 32>}, {pipeline_mode = #tpu.pipeline_mode<synchronous>, transform_indices = @transform_13, window_bounds = array<i64: 1, 32>}, {transform_indices = @transform_14, window_bounds = array<i64: 1, 8, 32>}]} {
    %c0_i32 = arith.constant 0 : i32
    %0 = arith.cmpi eq, %arg1, %c0_i32 : i32
    %c0_i32_0 = arith.constant 0 : i32
    %1 = arith.cmpi eq, %arg2, %c0_i32_0 : i32
    %2 = arith.andi %0, %1 : i1
    %3 = arith.extui %2 : i1 to i32
    %c0_i32_1 = arith.constant 0 : i32
    %4 = arith.cmpi ne, %3, %c0_i32_1 : i32
    scf.if %4 {
      %c0_39 = arith.constant 0 : index
      %c0_40 = arith.constant 0 : index
      %c0_41 = arith.constant 0 : index
      %56 = vector.load %arg3[%c0_39, %c0_40, %c0_41] : memref<1x8x32xf32, #tpu.memory_space<vmem>>, vector<1x8x32xf32>
      %57 = vector.shape_cast %56 : vector<1x8x32xf32> to vector<8x32xf32>
      %c0_42 = arith.constant 0 : index
      %c0_43 = arith.constant 0 : index
      %58 = vector.load %arg9[%c0_42, %c0_43] : memref<1x32xf32, #tpu.memory_space<vmem>>, vector<1x32xf32>
      %c0_44 = arith.constant 0 : index
      %c0_45 = arith.constant 0 : index
      %59 = vector.load %arg10[%c0_44, %c0_45] : memref<1x32xf32, #tpu.memory_space<vmem>>, vector<1x32xf32>
      %cst_46 = arith.constant dense<0.000000e+00> : vector<8xf32>
      %60 = vector.multi_reduction <add>, %57, %cst_46 [1] : vector<8x32xf32> to vector<8xf32>
      %61 = vector.shape_cast %60 : vector<8xf32> to vector<8x1xf32>
      %cst_47 = arith.constant 3.200000e+01 : f32
      %62 = vector.broadcast %cst_47 : f32 to vector<8x1xf32>
      %63 = arith.divf %61, %62 : vector<8x1xf32>
      %64 = vector.broadcast %63 : vector<8x1xf32> to vector<8x32xf32>
      %65 = arith.subf %57, %64 : vector<8x32xf32>
      %66 = arith.mulf %65, %65 : vector<8x32xf32>
      %cst_48 = arith.constant dense<0.000000e+00> : vector<8xf32>
      %67 = vector.multi_reduction <add>, %66, %cst_48 [1] : vector<8x32xf32> to vector<8xf32>
      %68 = vector.shape_cast %67 : vector<8xf32> to vector<8x1xf32>
      %cst_49 = arith.constant 0.0322580636 : f32
      %69 = vector.broadcast %cst_49 : f32 to vector<8x1xf32>
      %70 = arith.mulf %68, %69 : vector<8x1xf32>
      %71 = math.sqrt %70 : vector<8x1xf32>
      %cst_50 = arith.constant 9.99999997E-7 : f32
      %72 = vector.broadcast %cst_50 : f32 to vector<8x1xf32>
      %73 = arith.addf %71, %72 : vector<8x1xf32>
      %74 = vector.broadcast %73 : vector<8x1xf32> to vector<8x32xf32>
      %75 = arith.divf %65, %74 : vector<8x32xf32>
      %76 = vector.broadcast %58 : vector<1x32xf32> to vector<8x32xf32>
      %77 = arith.mulf %76, %75 : vector<8x32xf32>
      %78 = vector.broadcast %59 : vector<1x32xf32> to vector<8x32xf32>
      %79 = arith.addf %77, %78 : vector<8x32xf32>
      %80 = arith.truncf %79 : vector<8x32xf32> to vector<8x32xbf16>
      %c0_51 = arith.constant 0 : index
      %c0_52 = arith.constant 0 : index
      %81 = vector.load %arg5[%c0_51, %c0_52] : memref<32x96xbf16, #tpu.memory_space<vmem>>, vector<32x96xbf16>
      %cst_53 = arith.constant dense<0.000000e+00> : vector<8x96xf32>
      %82 = tpu.matmul %80, %81, %cst_53 {dimension_numbers = #tpu.dot_dimension_numbers<[1], [0], [0], [1], [0, 0, 1, 1], [], []>} : vector<8x32xbf16>, vector<32x96xbf16>, vector<8x96xf32> -> vector<8x96xf32>
      %c0_54 = arith.constant 0 : index
      %c0_55 = arith.constant 0 : index
      %83 = vector.load %arg6[%c0_54, %c0_55] : memref<1x96xf32, #tpu.memory_space<vmem>>, vector<1x96xf32>
      %84 = vector.broadcast %83 : vector<1x96xf32> to vector<8x96xf32>
      %85 = arith.addf %82, %84 : vector<8x96xf32>
      %86 = vector.extract_strided_slice %85 {offsets = [0, 0], sizes = [8, 8], strides = [1, 1]} : vector<8x96xf32> to vector<8x8xf32>
      %cst_56 = arith.constant 0.353553385 : f32
      %87 = vector.broadcast %cst_56 : f32 to vector<8x8xf32>
      %88 = arith.mulf %86, %87 : vector<8x8xf32>
      %89 = arith.truncf %88 : vector<8x8xf32> to vector<8x8xbf16>
      %c0_57 = arith.constant 0 : index
      %c0_58 = arith.constant 0 : index
      %c0_59 = arith.constant 0 : index
      %90 = vector.load %arg18[%c0_57, %c0_58, %c0_59] : memref<4x8x8xbf16, #tpu.memory_space<vmem>>, vector<1x8x8xbf16>
      %91 = vector.shape_cast %90 : vector<1x8x8xbf16> to vector<8x8xbf16>
      %92 = vector.shape_cast %89 : vector<8x8xbf16> to vector<1x8x8xbf16>
      tpu.vector_store %arg18[%c0_57, %c0_58, %c0_59], %92 {strides = array<i32>} : memref<4x8x8xbf16, #tpu.memory_space<vmem>>, vector<1x8x8xbf16>,
      %93 = vector.extract_strided_slice %85 {offsets = [0, 32], sizes = [8, 8], strides = [1, 1]} : vector<8x96xf32> to vector<8x8xf32>
      %94 = arith.truncf %93 : vector<8x8xf32> to vector<8x8xbf16>
      %c0_60 = arith.constant 0 : index
      %c0_61 = arith.constant 0 : index
      %c0_62 = arith.constant 0 : index
      %95 = vector.load %arg19[%c0_60, %c0_61, %c0_62] : memref<4x8x8xbf16, #tpu.memory_space<vmem>>, vector<1x8x8xbf16>
      %96 = vector.shape_cast %95 : vector<1x8x8xbf16> to vector<8x8xbf16>
      %97 = vector.shape_cast %94 : vector<8x8xbf16> to vector<1x8x8xbf16>
      tpu.vector_store %arg19[%c0_60, %c0_61, %c0_62], %97 {strides = array<i32>} : memref<4x8x8xbf16, #tpu.memory_space<vmem>>, vector<1x8x8xbf16>,
      %98 = vector.extract_strided_slice %85 {offsets = [0, 64], sizes = [8, 8], strides = [1, 1]} : vector<8x96xf32> to vector<8x8xf32>
      %99 = arith.truncf %98 : vector<8x8xf32> to vector<8x8xbf16>
      %c0_63 = arith.constant 0 : index
      %c0_64 = arith.constant 0 : index
      %c0_65 = arith.constant 0 : index
      %100 = vector.load %arg20[%c0_63, %c0_64, %c0_65] : memref<4x8x8xbf16, #tpu.memory_space<vmem>>, vector<1x8x8xbf16>
      %101 = vector.shape_cast %100 : vector<1x8x8xbf16> to vector<8x8xbf16>
      %102 = vector.shape_cast %99 : vector<8x8xbf16> to vector<1x8x8xbf16>
      tpu.vector_store %arg20[%c0_63, %c0_64, %c0_65], %102 {strides = array<i32>} : memref<4x8x8xbf16, #tpu.memory_space<vmem>>, vector<1x8x8xbf16>,
      %103 = vector.extract_strided_slice %85 {offsets = [0, 8], sizes = [8, 8], strides = [1, 1]} : vector<8x96xf32> to vector<8x8xf32>
      %cst_66 = arith.constant 0.353553385 : f32
      %104 = vector.broadcast %cst_66 : f32 to vector<8x8xf32>
      %105 = arith.mulf %103, %104 : vector<8x8xf32>
      %106 = arith.truncf %105 : vector<8x8xf32> to vector<8x8xbf16>
      %c1 = arith.constant 1 : index
      %c0_67 = arith.constant 0 : index
      %c0_68 = arith.constant 0 : index
      %107 = vector.load %arg18[%c1, %c0_67, %c0_68] : memref<4x8x8xbf16, #tpu.memory_space<vmem>>, vector<1x8x8xbf16>
      %108 = vector.shape_cast %107 : vector<1x8x8xbf16> to vector<8x8xbf16>
      %109 = vector.shape_cast %106 : vector<8x8xbf16> to vector<1x8x8xbf16>
      tpu.vector_store %arg18[%c1, %c0_67, %c0_68], %109 {strides = array<i32>} : memref<4x8x8xbf16, #tpu.memory_space<vmem>>, vector<1x8x8xbf16>,
      %110 = vector.extract_strided_slice %85 {offsets = [0, 40], sizes = [8, 8], strides = [1, 1]} : vector<8x96xf32> to vector<8x8xf32>
      %111 = arith.truncf %110 : vector<8x8xf32> to vector<8x8xbf16>
      %c1_69 = arith.constant 1 : index
      %c0_70 = arith.constant 0 : index
      %c0_71 = arith.constant 0 : index
      %112 = vector.load %arg19[%c1_69, %c0_70, %c0_71] : memref<4x8x8xbf16, #tpu.memory_space<vmem>>, vector<1x8x8xbf16>
      %113 = vector.shape_cast %112 : vector<1x8x8xbf16> to vector<8x8xbf16>
      %114 = vector.shape_cast %111 : vector<8x8xbf16> to vector<1x8x8xbf16>
      tpu.vector_store %arg19[%c1_69, %c0_70, %c0_71], %114 {strides = array<i32>} : memref<4x8x8xbf16, #tpu.memory_space<vmem>>, vector<1x8x8xbf16>,
      %115 = vector.extract_strided_slice %85 {offsets = [0, 72], sizes = [8, 8], strides = [1, 1]} : vector<8x96xf32> to vector<8x8xf32>
      %116 = arith.truncf %115 : vector<8x8xf32> to vector<8x8xbf16>
      %c1_72 = arith.constant 1 : index
      %c0_73 = arith.constant 0 : index
      %c0_74 = arith.constant 0 : index
      %117 = vector.load %arg20[%c1_72, %c0_73, %c0_74] : memref<4x8x8xbf16, #tpu.memory_space<vmem>>, vector<1x8x8xbf16>
      %118 = vector.shape_cast %117 : vector<1x8x8xbf16> to vector<8x8xbf16>
      %119 = vector.shape_cast %116 : vector<8x8xbf16> to vector<1x8x8xbf16>
      tpu.vector_store %arg20[%c1_72, %c0_73, %c0_74], %119 {strides = array<i32>} : memref<4x8x8xbf16, #tpu.memory_space<vmem>>, vector<1x8x8xbf16>,
      %120 = vector.extract_strided_slice %85 {offsets = [0, 16], sizes = [8, 8], strides = [1, 1]} : vector<8x96xf32> to vector<8x8xf32>
      %cst_75 = arith.constant 0.353553385 : f32
      %121 = vector.broadcast %cst_75 : f32 to vector<8x8xf32>
      %122 = arith.mulf %120, %121 : vector<8x8xf32>
      %123 = arith.truncf %122 : vector<8x8xf32> to vector<8x8xbf16>
      %c2 = arith.constant 2 : index
      %c0_76 = arith.constant 0 : index
      %c0_77 = arith.constant 0 : index
      %124 = vector.load %arg18[%c2, %c0_76, %c0_77] : memref<4x8x8xbf16, #tpu.memory_space<vmem>>, vector<1x8x8xbf16>
      %125 = vector.shape_cast %124 : vector<1x8x8xbf16> to vector<8x8xbf16>
      %126 = vector.shape_cast %123 : vector<8x8xbf16> to vector<1x8x8xbf16>
      tpu.vector_store %arg18[%c2, %c0_76, %c0_77], %126 {strides = array<i32>} : memref<4x8x8xbf16, #tpu.memory_space<vmem>>, vector<1x8x8xbf16>,
      %127 = vector.extract_strided_slice %85 {offsets = [0, 48], sizes = [8, 8], strides = [1, 1]} : vector<8x96xf32> to vector<8x8xf32>
      %128 = arith.truncf %127 : vector<8x8xf32> to vector<8x8xbf16>
      %c2_78 = arith.constant 2 : index
      %c0_79 = arith.constant 0 : index
      %c0_80 = arith.constant 0 : index
      %129 = vector.load %arg19[%c2_78, %c0_79, %c0_80] : memref<4x8x8xbf16, #tpu.memory_space<vmem>>, vector<1x8x8xbf16>
      %130 = vector.shape_cast %129 : vector<1x8x8xbf16> to vector<8x8xbf16>
      %131 = vector.shape_cast %128 : vector<8x8xbf16> to vector<1x8x8xbf16>
      tpu.vector_store %arg19[%c2_78, %c0_79, %c0_80], %131 {strides = array<i32>} : memref<4x8x8xbf16, #tpu.memory_space<vmem>>, vector<1x8x8xbf16>,
      %132 = vector.extract_strided_slice %85 {offsets = [0, 80], sizes = [8, 8], strides = [1, 1]} : vector<8x96xf32> to vector<8x8xf32>
      %133 = arith.truncf %132 : vector<8x8xf32> to vector<8x8xbf16>
      %c2_81 = arith.constant 2 : index
      %c0_82 = arith.constant 0 : index
      %c0_83 = arith.constant 0 : index
      %134 = vector.load %arg20[%c2_81, %c0_82, %c0_83] : memref<4x8x8xbf16, #tpu.memory_space<vmem>>, vector<1x8x8xbf16>
      %135 = vector.shape_cast %134 : vector<1x8x8xbf16> to vector<8x8xbf16>
      %136 = vector.shape_cast %133 : vector<8x8xbf16> to vector<1x8x8xbf16>
      tpu.vector_store %arg20[%c2_81, %c0_82, %c0_83], %136 {strides = array<i32>} : memref<4x8x8xbf16, #tpu.memory_space<vmem>>, vector<1x8x8xbf16>,
      %137 = vector.extract_strided_slice %85 {offsets = [0, 24], sizes = [8, 8], strides = [1, 1]} : vector<8x96xf32> to vector<8x8xf32>
      %cst_84 = arith.constant 0.353553385 : f32
      %138 = vector.broadcast %cst_84 : f32 to vector<8x8xf32>
      %139 = arith.mulf %137, %138 : vector<8x8xf32>
      %140 = arith.truncf %139 : vector<8x8xf32> to vector<8x8xbf16>
      %c3 = arith.constant 3 : index
      %c0_85 = arith.constant 0 : index
      %c0_86 = arith.constant 0 : index
      %141 = vector.load %arg18[%c3, %c0_85, %c0_86] : memref<4x8x8xbf16, #tpu.memory_space<vmem>>, vector<1x8x8xbf16>
      %142 = vector.shape_cast %141 : vector<1x8x8xbf16> to vector<8x8xbf16>
      %143 = vector.shape_cast %140 : vector<8x8xbf16> to vector<1x8x8xbf16>
      tpu.vector_store %arg18[%c3, %c0_85, %c0_86], %143 {strides = array<i32>} : memref<4x8x8xbf16, #tpu.memory_space<vmem>>, vector<1x8x8xbf16>,
      %144 = vector.extract_strided_slice %85 {offsets = [0, 56], sizes = [8, 8], strides = [1, 1]} : vector<8x96xf32> to vector<8x8xf32>
      %145 = arith.truncf %144 : vector<8x8xf32> to vector<8x8xbf16>
      %c3_87 = arith.constant 3 : index
      %c0_88 = arith.constant 0 : index
      %c0_89 = arith.constant 0 : index
      %146 = vector.load %arg19[%c3_87, %c0_88, %c0_89] : memref<4x8x8xbf16, #tpu.memory_space<vmem>>, vector<1x8x8xbf16>
      %147 = vector.shape_cast %146 : vector<1x8x8xbf16> to vector<8x8xbf16>
      %148 = vector.shape_cast %145 : vector<8x8xbf16> to vector<1x8x8xbf16>
      tpu.vector_store %arg19[%c3_87, %c0_88, %c0_89], %148 {strides = array<i32>} : memref<4x8x8xbf16, #tpu.memory_space<vmem>>, vector<1x8x8xbf16>,
      %149 = vector.extract_strided_slice %85 {offsets = [0, 88], sizes = [8, 8], strides = [1, 1]} : vector<8x96xf32> to vector<8x8xf32>
      %150 = arith.truncf %149 : vector<8x8xf32> to vector<8x8xbf16>
      %c3_90 = arith.constant 3 : index
      %c0_91 = arith.constant 0 : index
      %c0_92 = arith.constant 0 : index
      %151 = vector.load %arg20[%c3_90, %c0_91, %c0_92] : memref<4x8x8xbf16, #tpu.memory_space<vmem>>, vector<1x8x8xbf16>
      %152 = vector.shape_cast %151 : vector<1x8x8xbf16> to vector<8x8xbf16>
      %153 = vector.shape_cast %150 : vector<8x8xbf16> to vector<1x8x8xbf16>
      tpu.vector_store %arg20[%c3_90, %c0_91, %c0_92], %153 {strides = array<i32>} : memref<4x8x8xbf16, #tpu.memory_space<vmem>>, vector<1x8x8xbf16>,
    } else {
    }
    %c0_i32_2 = arith.constant 0 : i32
    %5 = arith.cmpi eq, %arg2, %c0_i32_2 : i32
    %6 = arith.extui %5 : i1 to i32
    %c0_i32_3 = arith.constant 0 : i32
    %7 = arith.cmpi ne, %6, %c0_i32_3 : i32
    scf.if %7 {
      %cst_39 = arith.constant 0xFF800000 : f32
      %56 = vector.broadcast %cst_39 : f32 to vector<4x8x1xf32>
      %c0_40 = arith.constant 0 : index
      %c0_41 = arith.constant 0 : index
      %c0_42 = arith.constant 0 : index
      %57 = vector.load %arg21[%c0_40, %c0_41, %c0_42] : memref<4x8x1xf32, #tpu.memory_space<vmem>>, vector<4x8x1xf32>
      tpu.vector_store %arg21[%c0_40, %c0_41, %c0_42], %56 {strides = array<i32>} : memref<4x8x1xf32, #tpu.memory_space<vmem>>, vector<4x8x1xf32>,
      %cst_43 = arith.constant 0.000000e+00 : f32
      %58 = vector.broadcast %cst_43 : f32 to vector<4x8x1xf32>
      %c0_44 = arith.constant 0 : index
      %c0_45 = arith.constant 0 : index
      %c0_46 = arith.constant 0 : index
      %59 = vector.load %arg22[%c0_44, %c0_45, %c0_46] : memref<4x8x1xf32, #tpu.memory_space<vmem>>, vector<4x8x1xf32>
      tpu.vector_store %arg22[%c0_44, %c0_45, %c0_46], %58 {strides = array<i32>} : memref<4x8x1xf32, #tpu.memory_space<vmem>>, vector<4x8x1xf32>,
      %cst_47 = arith.constant 0.000000e+00 : f32
      %60 = vector.broadcast %cst_47 : f32 to vector<4x8x8xf32>
      %c0_48 = arith.constant 0 : index
      %c0_49 = arith.constant 0 : index
      %c0_50 = arith.constant 0 : index
      %61 = vector.load %arg23[%c0_48, %c0_49, %c0_50] : memref<4x8x8xf32, #tpu.memory_space<vmem>>, vector<4x8x8xf32>
      tpu.vector_store %arg23[%c0_48, %c0_49, %c0_50], %60 {strides = array<i32>} : memref<4x8x8xf32, #tpu.memory_space<vmem>>, vector<4x8x8xf32>,
    } else {
    }
    %c8_i32 = arith.constant 8 : i32
    %8 = arith.muli %arg1, %c8_i32 : i32
    %9 = tpu.assume_multiple %8, 8 : i32
    %c8_i32_4 = arith.constant 8 : i32
    %10 = arith.muli %arg2, %c8_i32_4 : i32
    %11 = tpu.assume_multiple %10, 8 : i32
    %c0 = arith.constant 0 : index
    %12 = arith.index_cast %9 : i32 to index
    %c0_5 = arith.constant 0 : index
    %13 = vector.load %arg18[%c0, %12, %c0_5] : memref<4x8x8xbf16, #tpu.memory_space<vmem>>, vector<4x8x8xbf16>
    %c0_6 = arith.constant 0 : index
    %14 = arith.index_cast %11 : i32 to index
    %c0_7 = arith.constant 0 : index
    %15 = vector.load %arg19[%c0_6, %14, %c0_7] : memref<4x8x8xbf16, #tpu.memory_space<vmem>>, vector<4x8x8xbf16>
    %c0_8 = arith.constant 0 : index
    %16 = arith.index_cast %11 : i32 to index
    %c0_9 = arith.constant 0 : index
    %17 = vector.load %arg20[%c0_8, %16, %c0_9] : memref<4x8x8xbf16, #tpu.memory_space<vmem>>, vector<4x8x8xbf16>
    "tpu.trace_start"() <{level = 10 : i32, message = "hqd,hkd->hqk"}> : () -> ()
    %cst = arith.constant dense<0.000000e+00> : vector<4x8x8xf32>
    %18 = tpu.matmul %13, %15, %cst {dimension_numbers = #tpu.dot_dimension_numbers<[2], [2], [1], [1], [0, 0, 0, 1, 1, 1], [0], [0]>} : vector<4x8x8xbf16>, vector<4x8x8xbf16>, vector<4x8x8xf32> -> vector<4x8x8xf32>
    "tpu.trace_stop"() : () -> ()
    %c0_10 = arith.constant 0 : index
    %c0_11 = arith.constant 0 : index
    %c0_12 = arith.constant 0 : index
    %19 = vector.load %arg4[%c0_10, %c0_11, %c0_12] : memref<1x8x8xi8, #tpu.memory_space<vmem>>, vector<1x8x8xi8>
    %20 = vector.shape_cast %19 : vector<1x8x8xi8> to vector<8x8xi8>
    %21 = arith.sitofp %20 : vector<8x8xi8> to vector<8x8xf32>
    %cst_13 = arith.constant 0.000000e+00 : f32
    %22 = vector.broadcast %cst_13 : f32 to vector<8x8xf32>
    %23 = arith.cmpf oeq, %21, %22 : vector<8x8xf32>
    %cst_14 = arith.constant -1.000000e+09 : f32
    %cst_15 = arith.constant 0.000000e+00 : f32
    %24 = vector.broadcast %cst_14 : f32 to vector<8x8xf32>
    %25 = vector.broadcast %cst_15 : f32 to vector<8x8xf32>
    %26 = arith.select %23, %24, %25 : vector<8x8xi1>, vector<8x8xf32>
    %27 = vector.shape_cast %26 : vector<8x8xf32> to vector<1x8x8xf32>
    %28 = vector.broadcast %27 : vector<1x8x8xf32> to vector<4x8x8xf32>
    %29 = arith.addf %18, %28 : vector<4x8x8xf32>
    %c0_16 = arith.constant 0 : index
    %c0_17 = arith.constant 0 : index
    %c0_18 = arith.constant 0 : index
    %30 = vector.load %arg21[%c0_16, %c0_17, %c0_18] : memref<4x8x1xf32, #tpu.memory_space<vmem>>, vector<4x8x1xf32>
    %cst_19 = arith.constant dense<0xFF800000> : vector<4x8xf32>
    %31 = vector.multi_reduction <maximumf>, %29, %cst_19 [2] : vector<4x8x8xf32> to vector<4x8xf32>
    %32 = vector.shape_cast %31 : vector<4x8xf32> to vector<4x8x1xf32>
    %33 = arith.maximumf %30, %32 : vector<4x8x1xf32>
    %34 = arith.subf %30, %33 : vector<4x8x1xf32>
    %35 = math.exp %34 : vector<4x8x1xf32>
    %36 = vector.broadcast %33 : vector<4x8x1xf32> to vector<4x8x8xf32>
    %37 = arith.subf %29, %36 : vector<4x8x8xf32>
    %38 = math.exp %37 : vector<4x8x8xf32>
    %c0_20 = arith.constant 0 : index
    %c0_21 = arith.constant 0 : index
    %c0_22 = arith.constant 0 : index
    %39 = vector.load %arg22[%c0_20, %c0_21, %c0_22] : memref<4x8x1xf32, #tpu.memory_space<vmem>>, vector<4x8x1xf32>
    %40 = arith.mulf %35, %39 : vector<4x8x1xf32>
    %cst_23 = arith.constant dense<0.000000e+00> : vector<4x8xf32>
    %41 = vector.multi_reduction <add>, %38, %cst_23 [2] : vector<4x8x8xf32> to vector<4x8xf32>
    %42 = vector.shape_cast %41 : vector<4x8xf32> to vector<4x8x1xf32>
    %43 = arith.addf %40, %42 : vector<4x8x1xf32>
    %c0_24 = arith.constant 0 : index
    %c0_25 = arith.constant 0 : index
    %c0_26 = arith.constant 0 : index
    %44 = vector.load %arg22[%c0_24, %c0_25, %c0_26] : memref<4x8x1xf32, #tpu.memory_space<vmem>>, vector<4x8x1xf32>
    tpu.vector_store %arg22[%c0_24, %c0_25, %c0_26], %43 {strides = array<i32>} : memref<4x8x1xf32, #tpu.memory_space<vmem>>, vector<4x8x1xf32>,
    %c0_27 = arith.constant 0 : index
    %c0_28 = arith.constant 0 : index
    %c0_29 = arith.constant 0 : index
    %45 = vector.load %arg23[%c0_27, %c0_28, %c0_29] : memref<4x8x8xf32, #tpu.memory_space<vmem>>, vector<4x8x8xf32>
    %46 = vector.broadcast %35 : vector<4x8x1xf32> to vector<4x8x8xf32>
    %47 = arith.mulf %46, %45 : vector<4x8x8xf32>
    %48 = arith.truncf %38 : vector<4x8x8xf32> to vector<4x8x8xbf16>
    "tpu.trace_start"() <{level = 10 : i32, message = "hqk,hkd->hqd"}> : () -> ()
    %cst_30 = arith.constant dense<0.000000e+00> : vector<4x8x8xf32>
    %49 = tpu.matmul %48, %17, %cst_30 {dimension_numbers = #tpu.dot_dimension_numbers<[2], [1], [1], [2], [0, 0, 0, 1, 1, 2], [0], [0]>} : vector<4x8x8xbf16>, vector<4x8x8xbf16>, vector<4x8x8xf32> -> vector<4x8x8xf32>
    "tpu.trace_stop"() : () -> ()
    %50 = arith.addf %47, %49 : vector<4x8x8xf32>
    %c0_31 = arith.constant 0 : index
    %c0_32 = arith.constant 0 : index
    %c0_33 = arith.constant 0 : index
    %51 = vector.load %arg23[%c0_31, %c0_32, %c0_33] : memref<4x8x8xf32, #tpu.memory_space<vmem>>, vector<4x8x8xf32>
    tpu.vector_store %arg23[%c0_31, %c0_32, %c0_33], %50 {strides = array<i32>} : memref<4x8x8xf32, #tpu.memory_space<vmem>>, vector<4x8x8xf32>,
    %c0_34 = arith.constant 0 : index
    %c0_35 = arith.constant 0 : index
    %c0_36 = arith.constant 0 : index
    %52 = vector.load %arg21[%c0_34, %c0_35, %c0_36] : memref<4x8x1xf32, #tpu.memory_space<vmem>>, vector<4x8x1xf32>
    tpu.vector_store %arg21[%c0_34, %c0_35, %c0_36], %33 {strides = array<i32>} : memref<4x8x1xf32, #tpu.memory_space<vmem>>, vector<4x8x1xf32>,
    %c0_i32_37 = arith.constant 0 : i32
    %53 = arith.cmpi eq, %arg2, %c0_i32_37 : i32
    %54 = arith.extui %53 : i1 to i32
    %c0_i32_38 = arith.constant 0 : i32
    %55 = arith.cmpi ne, %54, %c0_i32_38 : i32
    scf.if %55 {
      %c0_39 = arith.constant 0 : index
      %c0_40 = arith.constant 0 : index
      %c0_41 = arith.constant 0 : index
      %56 = vector.load %arg22[%c0_39, %c0_40, %c0_41] : memref<4x8x1xf32, #tpu.memory_space<vmem>>, vector<4x8x1xf32>
      %57 = tpu.reciprocal %56 {approx = true} : vector<4x8x1xf32> -> vector<4x8x1xf32>
      %c0_42 = arith.constant 0 : index
      %c0_43 = arith.constant 0 : index
      %c0_44 = arith.constant 0 : index
      %58 = vector.load %arg23[%c0_42, %c0_43, %c0_44] : memref<4x8x8xf32, #tpu.memory_space<vmem>>, vector<1x8x8xf32>
      %59 = vector.shape_cast %58 : vector<1x8x8xf32> to vector<8x8xf32>
      %60 = vector.extract_strided_slice %57 {offsets = [0, 0, 0], sizes = [1, 8, 1], strides = [1, 1, 1]} : vector<4x8x1xf32> to vector<1x8x1xf32>
      %61 = vector.shape_cast %60 : vector<1x8x1xf32> to vector<8x1xf32>
      %62 = vector.broadcast %61 : vector<8x1xf32> to vector<8x8xf32>
      %63 = arith.mulf %59, %62 : vector<8x8xf32>
      %64 = arith.truncf %63 : vector<8x8xf32> to vector<8x8xbf16>
      %c1 = arith.constant 1 : index
      %c0_45 = arith.constant 0 : index
      %c0_46 = arith.constant 0 : index
      %65 = vector.load %arg23[%c1, %c0_45, %c0_46] : memref<4x8x8xf32, #tpu.memory_space<vmem>>, vector<1x8x8xf32>
      %66 = vector.shape_cast %65 : vector<1x8x8xf32> to vector<8x8xf32>
      %67 = vector.extract_strided_slice %57 {offsets = [1, 0, 0], sizes = [1, 8, 1], strides = [1, 1, 1]} : vector<4x8x1xf32> to vector<1x8x1xf32>
      %68 = vector.shape_cast %67 : vector<1x8x1xf32> to vector<8x1xf32>
      %69 = vector.broadcast %68 : vector<8x1xf32> to vector<8x8xf32>
      %70 = arith.mulf %66, %69 : vector<8x8xf32>
      %71 = arith.truncf %70 : vector<8x8xf32> to vector<8x8xbf16>
      %c2 = arith.constant 2 : index
      %c0_47 = arith.constant 0 : index
      %c0_48 = arith.constant 0 : index
      %72 = vector.load %arg23[%c2, %c0_47, %c0_48] : memref<4x8x8xf32, #tpu.memory_space<vmem>>, vector<1x8x8xf32>
      %73 = vector.shape_cast %72 : vector<1x8x8xf32> to vector<8x8xf32>
      %74 = vector.extract_strided_slice %57 {offsets = [2, 0, 0], sizes = [1, 8, 1], strides = [1, 1, 1]} : vector<4x8x1xf32> to vector<1x8x1xf32>
      %75 = vector.shape_cast %74 : vector<1x8x1xf32> to vector<8x1xf32>
      %76 = vector.broadcast %75 : vector<8x1xf32> to vector<8x8xf32>
      %77 = arith.mulf %73, %76 : vector<8x8xf32>
      %78 = arith.truncf %77 : vector<8x8xf32> to vector<8x8xbf16>
      %c3 = arith.constant 3 : index
      %c0_49 = arith.constant 0 : index
      %c0_50 = arith.constant 0 : index
      %79 = vector.load %arg23[%c3, %c0_49, %c0_50] : memref<4x8x8xf32, #tpu.memory_space<vmem>>, vector<1x8x8xf32>
      %80 = vector.shape_cast %79 : vector<1x8x8xf32> to vector<8x8xf32>
      %81 = vector.extract_strided_slice %57 {offsets = [3, 0, 0], sizes = [1, 8, 1], strides = [1, 1, 1]} : vector<4x8x1xf32> to vector<1x8x1xf32>
      %82 = vector.shape_cast %81 : vector<1x8x1xf32> to vector<8x1xf32>
      %83 = vector.broadcast %82 : vector<8x1xf32> to vector<8x8xf32>
      %84 = arith.mulf %80, %83 : vector<8x8xf32>
      %85 = arith.truncf %84 : vector<8x8xf32> to vector<8x8xbf16>
      %86 = tpu.concatenate %64, %71, %78, %85 in 1 : vector<8x8xbf16>, vector<8x8xbf16>, vector<8x8xbf16>, vector<8x8xbf16> -> vector<8x32xbf16>
      %c0_51 = arith.constant 0 : index
      %c0_52 = arith.constant 0 : index
      %87 = vector.load %arg7[%c0_51, %c0_52] : memref<32x32xbf16, #tpu.memory_space<vmem>>, vector<32x32xbf16>
      %cst_53 = arith.constant dense<0.000000e+00> : vector<8x32xf32>
      %88 = tpu.matmul %86, %87, %cst_53 {dimension_numbers = #tpu.dot_dimension_numbers<[1], [0], [0], [1], [0, 0, 1, 1], [], []>} : vector<8x32xbf16>, vector<32x32xbf16>, vector<8x32xf32> -> vector<8x32xf32>
      %c0_54 = arith.constant 0 : index
      %c0_55 = arith.constant 0 : index
      %89 = vector.load %arg8[%c0_54, %c0_55] : memref<1x32xf32, #tpu.memory_space<vmem>>, vector<1x32xf32>
      %90 = vector.broadcast %89 : vector<1x32xf32> to vector<8x32xf32>
      %91 = arith.addf %88, %90 : vector<8x32xf32>
      %c0_56 = arith.constant 0 : index
      %92 = arith.index_cast %9 : i32 to index
      %c0_57 = arith.constant 0 : index
      %93 = vector.load %arg3[%c0_56, %92, %c0_57] : memref<1x8x32xf32, #tpu.memory_space<vmem>>, vector<1x8x32xf32>
      %94 = vector.shape_cast %93 : vector<1x8x32xf32> to vector<8x32xf32>
      %95 = arith.addf %94, %91 : vector<8x32xf32>
      %c0_58 = arith.constant 0 : index
      %c0_59 = arith.constant 0 : index
      %96 = vector.load %arg11[%c0_58, %c0_59] : memref<1x32xf32, #tpu.memory_space<vmem>>, vector<1x32xf32>
      %c0_60 = arith.constant 0 : index
      %c0_61 = arith.constant 0 : index
      %97 = vector.load %arg12[%c0_60, %c0_61] : memref<1x32xf32, #tpu.memory_space<vmem>>, vector<1x32xf32>
      %cst_62 = arith.constant dense<0.000000e+00> : vector<8xf32>
      %98 = vector.multi_reduction <add>, %95, %cst_62 [1] : vector<8x32xf32> to vector<8xf32>
      %99 = vector.shape_cast %98 : vector<8xf32> to vector<8x1xf32>
      %cst_63 = arith.constant 3.200000e+01 : f32
      %100 = vector.broadcast %cst_63 : f32 to vector<8x1xf32>
      %101 = arith.divf %99, %100 : vector<8x1xf32>
      %102 = vector.broadcast %101 : vector<8x1xf32> to vector<8x32xf32>
      %103 = arith.subf %95, %102 : vector<8x32xf32>
      %104 = arith.mulf %103, %103 : vector<8x32xf32>
      %cst_64 = arith.constant dense<0.000000e+00> : vector<8xf32>
      %105 = vector.multi_reduction <add>, %104, %cst_64 [1] : vector<8x32xf32> to vector<8xf32>
      %106 = vector.shape_cast %105 : vector<8xf32> to vector<8x1xf32>
      %cst_65 = arith.constant 0.0322580636 : f32
      %107 = vector.broadcast %cst_65 : f32 to vector<8x1xf32>
      %108 = arith.mulf %106, %107 : vector<8x1xf32>
      %109 = math.sqrt %108 : vector<8x1xf32>
      %cst_66 = arith.constant 9.99999997E-7 : f32
      %110 = vector.broadcast %cst_66 : f32 to vector<8x1xf32>
      %111 = arith.addf %109, %110 : vector<8x1xf32>
      %112 = vector.broadcast %111 : vector<8x1xf32> to vector<8x32xf32>
      %113 = arith.divf %103, %112 : vector<8x32xf32>
      %114 = vector.broadcast %96 : vector<1x32xf32> to vector<8x32xf32>
      %115 = arith.mulf %114, %113 : vector<8x32xf32>
      %116 = vector.broadcast %97 : vector<1x32xf32> to vector<8x32xf32>
      %117 = arith.addf %115, %116 : vector<8x32xf32>
      %118 = arith.truncf %117 : vector<8x32xf32> to vector<8x32xbf16>
      %c0_67 = arith.constant 0 : index
      %c0_68 = arith.constant 0 : index
      %119 = vector.load %arg13[%c0_67, %c0_68] : memref<32x64xbf16, #tpu.memory_space<vmem>>, vector<32x64xbf16>
      %cst_69 = arith.constant dense<0.000000e+00> : vector<8x64xf32>
      %120 = tpu.matmul %118, %119, %cst_69 {dimension_numbers = #tpu.dot_dimension_numbers<[1], [0], [0], [1], [0, 0, 1, 1], [], []>} : vector<8x32xbf16>, vector<32x64xbf16>, vector<8x64xf32> -> vector<8x64xf32>
      %c0_70 = arith.constant 0 : index
      %c0_71 = arith.constant 0 : index
      %121 = vector.load %arg14[%c0_70, %c0_71] : memref<1x64xf32, #tpu.memory_space<vmem>>, vector<1x64xf32>
      %122 = vector.broadcast %121 : vector<1x64xf32> to vector<8x64xf32>
      %123 = arith.addf %120, %122 : vector<8x64xf32>
      %cst_72 = arith.constant 0.000000e+00 : f32
      %124 = vector.broadcast %cst_72 : f32 to vector<8x64xf32>
      %125 = arith.maximumf %123, %124 : vector<8x64xf32>
      %126 = arith.truncf %125 : vector<8x64xf32> to vector<8x64xbf16>
      %c0_73 = arith.constant 0 : index
      %c0_74 = arith.constant 0 : index
      %127 = vector.load %arg15[%c0_73, %c0_74] : memref<64x32xbf16, #tpu.memory_space<vmem>>, vector<64x32xbf16>
      %cst_75 = arith.constant dense<0.000000e+00> : vector<8x32xf32>
      %128 = tpu.matmul %126, %127, %cst_75 {dimension_numbers = #tpu.dot_dimension_numbers<[1], [0], [0], [1], [0, 0, 1, 1], [], []>} : vector<8x64xbf16>, vector<64x32xbf16>, vector<8x32xf32> -> vector<8x32xf32>
      %c0_76 = arith.constant 0 : index
      %c0_77 = arith.constant 0 : index
      %129 = vector.load %arg16[%c0_76, %c0_77] : memref<1x32xf32, #tpu.memory_space<vmem>>, vector<1x32xf32>
      %130 = vector.broadcast %129 : vector<1x32xf32> to vector<8x32xf32>
      %131 = arith.addf %128, %130 : vector<8x32xf32>
      %132 = arith.addf %95, %131 : vector<8x32xf32>
      %c0_78 = arith.constant 0 : index
      %c0_79 = arith.constant 0 : index
      %c0_80 = arith.constant 0 : index
      %133 = vector.load %arg17[%c0_78, %c0_79, %c0_80] : memref<1x8x32xf32, #tpu.memory_space<vmem>>, vector<1x8x32xf32>
      %134 = vector.shape_cast %133 : vector<1x8x32xf32> to vector<8x32xf32>
      %135 = vector.shape_cast %132 : vector<8x32xf32> to vector<1x8x32xf32>
      tpu.vector_store %arg17[%c0_78, %c0_79, %c0_80], %135 {strides = array<i32>} : memref<1x8x32xf32, #tpu.memory_space<vmem>>, vector<1x8x32xf32>,
    } else {
    }
    return
  }
  func.func @transform_0(%arg0: i32, %arg1: i32, %arg2: i32) -> (i32, i32, i32) {
    %c0_i32 = arith.constant 0 : i32
    %c0_i32_0 = arith.constant 0 : i32
    %c0_i32_1 = arith.constant 0 : i32
    return %arg0, %c0_i32, %c0_i32_0 : i32, i32, i32
  }
  func.func @transform_1(%arg0: i32, %arg1: i32, %arg2: i32) -> (i32, i32, i32) {
    %c0_i32 = arith.constant 0 : i32
    return %arg0, %arg1, %arg2 : i32, i32, i32
  }
  func.func @transform_2(%arg0: i32, %arg1: i32, %arg2: i32) -> (i32, i32) {
    %c0_i32 = arith.constant 0 : i32
    %c0_i32_0 = arith.constant 0 : i32
    %c0_i32_1 = arith.constant 0 : i32
    return %c0_i32, %c0_i32_0 : i32, i32
  }
  func.func @transform_3(%arg0: i32, %arg1: i32, %arg2: i32) -> (i32, i32) {
    %c0_i32 = arith.constant 0 : i32
    %c0_i32_0 = arith.constant 0 : i32
    %c0_i32_1 = arith.constant 0 : i32
    return %c0_i32, %c0_i32_0 : i32, i32
  }
  func.func @transform_4(%arg0: i32, %arg1: i32, %arg2: i32) -> (i32, i32) {
    %c0_i32 = arith.constant 0 : i32
    %c0_i32_0 = arith.constant 0 : i32
    %c0_i32_1 = arith.constant 0 : i32
    return %c0_i32, %c0_i32_0 : i32, i32
  }
  func.func @transform_5(%arg0: i32, %arg1: i32, %arg2: i32) -> (i32, i32) {
    %c0_i32 = arith.constant 0 : i32
    %c0_i32_0 = arith.constant 0 : i32
    %c0_i32_1 = arith.constant 0 : i32
    return %c0_i32, %c0_i32_0 : i32, i32
  }
  func.func @transform_6(%arg0: i32, %arg1: i32, %arg2: i32) -> (i32, i32) {
    %c0_i32 = arith.constant 0 : i32
    %c0_i32_0 = arith.constant 0 : i32
    %c0_i32_1 = arith.constant 0 : i32
    return %c0_i32, %c0_i32_0 : i32, i32
  }
  func.func @transform_7(%arg0: i32, %arg1: i32, %arg2: i32) -> (i32, i32) {
    %c0_i32 = arith.constant 0 : i32
    %c0_i32_0 = arith.constant 0 : i32
    %c0_i32_1 = arith.constant 0 : i32
    return %c0_i32, %c0_i32_0 : i32, i32
  }
  func.func @transform_8(%arg0: i32, %arg1: i32, %arg2: i32) -> (i32, i32) {
    %c0_i32 = arith.constant 0 : i32
    %c0_i32_0 = arith.constant 0 : i32
    %c0_i32_1 = arith.constant 0 : i32
    return %c0_i32, %c0_i32_0 : i32, i32
  }
  func.func @transform_9(%arg0: i32, %arg1: i32, %arg2: i32) -> (i32, i32) {
    %c0_i32 = arith.constant 0 : i32
    %c0_i32_0 = arith.constant 0 : i32
    %c0_i32_1 = arith.constant 0 : i32
    return %c0_i32, %c0_i32_0 : i32, i32
  }
  func.func @transform_10(%arg0: i32, %arg1: i32, %arg2: i32) -> (i32, i32) {
    %c0_i32 = arith.constant 0 : i32
    %c0_i32_0 = arith.constant 0 : i32
    %c0_i32_1 = arith.constant 0 : i32
    return %c0_i32, %c0_i32_0 : i32, i32
  }
  func.func @transform_11(%arg0: i32, %arg1: i32, %arg2: i32) -> (i32, i32) {
    %c0_i32 = arith.constant 0 : i32
    %c0_i32_0 = arith.constant 0 : i32
    %c0_i32_1 = arith.constant 0 : i32
    return %c0_i32, %c0_i32_0 : i32, i32
  }
  func.func @transform_12(%arg0: i32, %arg1: i32, %arg2: i32) -> (i32, i32) {
    %c0_i32 = arith.constant 0 : i32
    %c0_i32_0 = arith.constant 0 : i32
    %c0_i32_1 = arith.constant 0 : i32
    return %c0_i32, %c0_i32_0 : i32, i32
  }
  func.func @transform_13(%arg0: i32, %arg1: i32, %arg2: i32) -> (i32, i32) {
    %c0_i32 = arith.constant 0 : i32
    %c0_i32_0 = arith.constant 0 : i32
    %c0_i32_1 = arith.constant 0 : i32
    return %c0_i32, %c0_i32_0 : i32, i32
  }
  func.func @transform_14(%arg0: i32, %arg1: i32, %arg2: i32) -> (i32, i32, i32) {
    %c0_i32 = arith.constant 0 : i32
    %c0_i32_0 = arith.constant 0 : i32
    return %arg0, %arg1, %c0_i32 : i32, i32, i32
  }
}

</mosaic_0001>

<bundles_post_ra>
// kernel: tpu_custom_call.1
= control target key start
LH: loop header
LB: loop body
LE: loop exit
PB: predicated region body
PF: predicated region fallthrough
CT: control target
= control target key end

     0   :  { %s2989_s0 = inlined_call_operand.vmem [shape: f32[2,8,32], index: 0, kind: input, shape index: {}]   ;;  %s2990_s1 = inlined_call_operand.hbm [shape: s8[2,8,8], index: 1, kind: input, shape index: {}]   ;;  %s2991_s2 = inlined_call_operand.vmem [shape: bf16[32,96], index: 2, kind: input, shape index: {}]   ;;  %s2992_s3 = inlined_call_operand.vmem [shape: f32[1,96], index: 3, kind: input, shape index: {}]   ;;  %s2993_s4 = inlined_call_operand.vmem [shape: bf16[32,32], index: 4, kind: input, shape index: {}]   ;;  %s2994_s5 = inlined_call_operand.vmem [shape: f32[1,32], index: 5, kind: input, shape index: {}]   ;;  %s2995_s6 = inlined_call_operand.hbm [shape: f32[1,32], index: 6, kind: input, shape index: {}]   ;;  %s2996_s7 = inlined_call_operand.hbm [shape: f32[1,32], index: 7, kind: input, shape index: {}]   ;;  %s2997_s8 = inlined_call_operand.hbm [shape: f32[1,32], index: 8, kind: input, shape index: {}]   ;;  %s2998_s9 = inlined_call_operand.hbm [shape: f32[1,32], index: 9, kind: input, shape index: {}]   ;;  %s2999_s10 = inlined_call_operand.vmem [shape: bf16[32,64], index: 10, kind: input, shape index: {}]   ;;  %s3000_s11 = inlined_call_operand.vmem [shape: f32[1,64], index: 11, kind: input, shape index: {}]   ;;  %s3001_s12 = inlined_call_operand.vmem [shape: bf16[64,32], index: 12, kind: input, shape index: {}]   ;;  %s3002_s13 = inlined_call_operand.vmem [shape: f32[1,32], index: 13, kind: input, shape index: {}]   ;;  %s3003_s14 = inlined_call_operand.hbm [shape: f32[2,8,32], index: 14, kind: output, shape index: {}]  }
   0x1   :  { %3012 = sst [smem:[#allocation22_spill]] %s2994_s5 }
   0x2   :  { %3013 = sst [smem:[#allocation23_spill]] %s2995_s6 }
   0x3   :  { %3014 = sst [smem:[#allocation24_spill]] %s2996_s7 }
   0x4   :  { %3015 = sst [smem:[#allocation25_spill]] %s2997_s8 }
   0x5   :  { %3016 = sst [smem:[#allocation26_spill]] %s2999_s10 }
   0x6   :  { %3017 = sst [smem:[#allocation27_spill]] %s3000_s11 }
   0x7   :  { %3018 = sst [smem:[#allocation28_spill]] %s3001_s12 }
   0x8   :  { %3019 = sst [smem:[#allocation29_spill]] %s3002_s13 }
   0x9   :  { %3020 = sst [smem:[#allocation30_spill]] %s3003_s14 }
   0xa   :  { %19 = vsyncpa [#allocation9], 0 }
   0xb   :  { %21 = vsyncpa [#allocation9 + $0x1], 0 }
   0xc   :  { %22 = vsyncpa [#allocation12], 0 }
   0xd   :  { %23 = vsyncpa [#allocation15], 0 }
   0xe   :  { %24 = vsyncpa [#allocation10], 0 }
   0xf   :  { %26 = vsyncpa [#allocation10 + $0x1], 0  ;;  %s2456_s29 = smov 0   ;;  %s2458_s30 = smov 0  }
  0x10   :  { %s2460_s15 = smov 0   ;;  %s2462_s16 = smov 0  }
  0x11   :  { %s2464_s17 = smov 0   ;;  %s2466_s18 = smov 0  }
  0x12 LB: > { %s3004_s19 = sadd.s32 4294967295, %s2355_s18   ;;  %p1790_p0 = scmp.ge.s32.totalorder %s2355_s18, 1  ;;  %s2355_s18 = sphi %s2466_s18, %s32_s18   ;;  %s2351_s17 = sphi %s2464_s17, %s3050_s17   ;;  %s2347_s16 = sphi %s2462_s16, %s3049_s16   ;;  %s2343_s15 = sphi %s2460_s15, %s3048_s15   ;;  %s2339_s30 = sphi %s2458_s30, %s3047_s30   ;;  %s2335_s29 = sphi %s2456_s29, %s3046_s29  }
  0x13   : > { %p2490_p1 = scmp.eq.s32.totalorder %s3004_s19, 0  ;;  %p392_p2 = scmp.lt.s32.totalorder %s2355_s18, 3 }
  0x14   : > { %s2357_s22 = smov [#allocation11]   ;;  %s2358_s24 = smov [#allocation14]  }
  0x15   : > { %s3021_s20 = scalar_select %p2490_p1, 1, 0 }
  0x16   : > { %p2495_p3 = pnand %p1790_p0, %p392_p2  ;;  %s417_s23 = sshll.u32 %s2357_s22, 4  ;;  %s418_s23 = int_to_ptr.vmem [resolvable:$true] %s417_s23 }
  0x17   : > { %s439_s25 = sshll.u32 %s2358_s24, 4  ;;  %s2359_s27 = smov [#allocation13]   ;;  %s2508_s25 = int_to_ptr.vmem [resolvable:$true] %s439_s25 }
  0x18   : > { %s3022_s21 = scalar_select %p2495_p3, 1, 0 }
  0x19   : > { %p1978_p5 = pneg %p2495_p3  ;;  %s428_s28 = sshll.u32 %s2359_s27, 4  ;;  %s2510_s28 = int_to_ptr.vmem [resolvable:$true] %s428_s28 }
  0x1a   : > { %s3024_s6 = sld [smem:[#allocation23_spill]] }
  0x1b   : > { %p2504_p6 = pnand %p1978_p5, %p2490_p1 }
  0x1d   : > { %p2520_p8 = pneg %p2504_p6 }
  0x20   : > { %s2123_s14 = scalar_lea.hbm %s3024_s6, 16 }
  0x21   : > { %p2124_p7 = scmp.ne.s32.totalorder %s3024_s6, %s2123_s14  ;;  %p2130_p11 = scmp.lt.u32.totalorder %s2123_s14, %s3024_s6 }
  0x23   : > { %p2126_p9 = pnand %p2520_p8, %p2124_p7 }
  0x25   : > { %p2127_p10 = pneg %p2126_p9 }
  0x27   : > { %p2132_p12 = pnand %p2130_p11, %p2127_p10 }
  0x29   : > { %2135 = shalt.err (!%p2132_p12)
}
  0x2a   : > { %s2136_s19 = scalar_lea.vmem %s418_s23, 16  ;;  %s2143_s11 = scalar_lea.vmem %s418_s23, 32 }
  0x2b   : > { %p2137_p13 = scmp.ne.s32.totalorder %s418_s23, %s2136_s19  ;;  %p2144_p5 = scmp.lt.s32.totalorder %s418_s23, %s418_s23 }
  0x2c   : > { %p2145_p4 = scmp.lt.s32.totalorder %s2143_s11, %s2136_s19 }
  0x2d   : > { %p2139_p0 = pnand %p2137_p13, %p2520_p8 }
  0x2e   : > { %p2146_p3 = por %p2145_p4, %p2144_p5 }
  0x2f   : > { %p2140_p2 = pneg %p2139_p0 }
  0x31   : > { %p2147_p1 = pnand %p2146_p3, %p2140_p2 }
  0x33   : > { %2150 = shalt.err (!%p2147_p1)
}
  0x34   : > { %1981 = dma.hbm_to_vmem [thread:$0]  (!%p2504_p6), %s3024_s6, 16, %s418_s23, [#allocation12]  }
  0x35   : > { %s3026_s8 = sld [smem:[#allocation25_spill]] }
  0x3b   : > { %s2151_s27 = scalar_lea.hbm %s3026_s8, 16 }
  0x3c   : > { %p2152_p7 = scmp.ne.s32.totalorder %s3026_s8, %s2151_s27  ;;  %p2158_p1 = scmp.lt.u32.totalorder %s2151_s27, %s3026_s8 }
  0x3e   : > { %p2154_p9 = pnand %p2152_p7, %p2520_p8 }
  0x40   : > { %p2155_p4 = pneg %p2154_p9 }
  0x42   : > { %p2160_p3 = pnand %p2158_p1, %p2155_p4 }
  0x44   : > { %2163 = shalt.err (!%p2160_p3)
}
  0x45   : > { %s2164_s23 = scalar_lea.vmem %s2508_s25, 16  ;;  %s2171_s5 = scalar_lea.vmem %s2508_s25, 32 }
  0x46   : > { %p2165_p10 = scmp.ne.s32.totalorder %s2508_s25, %s2164_s23  ;;  %p2172_p13 = scmp.lt.s32.totalorder %s2508_s25, %s2508_s25 }
  0x47   : > { %p2173_p0 = scmp.lt.s32.totalorder %s2171_s5, %s2164_s23 }
  0x48   : > { %p2167_p11 = pnand %p2165_p10, %p2520_p8 }
  0x49   : > { %p2174_p2 = por %p2173_p0, %p2172_p13 }
  0x4a   : > { %p2168_p12 = pneg %p2167_p11 }
  0x4c   : > { %p2175_p5 = pnand %p2174_p2, %p2168_p12 }
  0x4e   : > { %2178 = shalt.err (!%p2175_p5)
}
  0x4f   : > { %1987 = dma.hbm_to_vmem [thread:$0]  (!%p2504_p6), %s3026_s8, 16, %s2508_s25, [#allocation15]  }
  0x50   : > { %s3027_s7 = sld [smem:[#allocation24_spill]] }
  0x56   : > { %s2179_s14 = scalar_lea.hbm %s3027_s7, 16 }
  0x57   : > { %p2180_p7 = scmp.ne.s32.totalorder %s3027_s7, %s2179_s14  ;;  %p2186_p1 = scmp.lt.u32.totalorder %s2179_s14, %s3027_s7 }
  0x59   : > { %p2182_p9 = pnand %p2180_p7, %p2520_p8 }
  0x5b   : > { %p2183_p4 = pneg %p2182_p9 }
  0x5d   : > { %p2188_p3 = pnand %p2186_p1, %p2183_p4 }
  0x5f   : > { %2191 = shalt.err (!%p2188_p3)
}
  0x60   : > { %s2192_s25 = scalar_lea.vmem %s2510_s28, 16  ;;  %s2199_s5 = scalar_lea.vmem %s2510_s28, 32 }
  0x61   : > { %p2193_p10 = scmp.ne.s32.totalorder %s2510_s28, %s2192_s25  ;;  %p2200_p13 = scmp.lt.s32.totalorder %s2510_s28, %s2510_s28 }
  0x62   : > { %p2201_p0 = scmp.lt.s32.totalorder %s2199_s5, %s2192_s25 }
  0x63   : > { %p2195_p11 = pnand %p2193_p10, %p2520_p8 }
  0x64   : > { %p2202_p2 = por %p2201_p0, %p2200_p13 }
  0x65   : > { %p2196_p12 = pneg %p2195_p11 }
  0x67   : > { %p2203_p5 = pnand %p2202_p2, %p2196_p12 }
  0x69   : > { %2206 = shalt.err (!%p2203_p5)
}
  0x6a   : > { %1984 = dma.hbm_to_vmem [thread:$0]  (!%p2504_p6), %s3027_s7, 16, %s2510_s28, [#allocation12]  }
  0x6b   : > { %s2360_s22 = smov [#allocation16]   ;;  %s2207_s19 = scalar_lea.hbm %s2998_s9, 16 }
  0x6c   : > { %s450_s12 = sshll.u32 %s2360_s22, 4  ;;  %p2208_p7 = scmp.ne.s32.totalorder %s2998_s9, %s2207_s19  ;;  %s451_s12 = int_to_ptr.vmem [resolvable:$true] %s450_s12 }
  0x6d   : > { %p2214_p1 = scmp.lt.u32.totalorder %s2207_s19, %s2998_s9 }
  0x6e   : > { %p2210_p9 = pnand %p2208_p7, %p2520_p8 }
  0x70   : > { %p2211_p4 = pneg %p2210_p9 }
  0x72   : > { %p2216_p3 = pnand %p2214_p1, %p2211_p4 }
  0x74   : > { %2219 = shalt.err (!%p2216_p3)
}
  0x75   : > { %s2220_s28 = scalar_lea.vmem %s451_s12, 16  ;;  %s2227_s10 = scalar_lea.vmem %s451_s12, 32 }
  0x76   : > { %p2221_p10 = scmp.ne.s32.totalorder %s451_s12, %s2220_s28  ;;  %p2228_p13 = scmp.lt.s32.totalorder %s451_s12, %s451_s12 }
  0x77   : > { %p2229_p0 = scmp.lt.s32.totalorder %s2227_s10, %s2220_s28 }
  0x78   : > { %p2223_p11 = pnand %p2221_p10, %p2520_p8 }
  0x79   : > { %p2230_p2 = por %p2229_p0, %p2228_p13 }
  0x7a   : > { %p2224_p12 = pneg %p2223_p11 }
  0x7c   : > { %p2231_p5 = pnand %p2230_p2, %p2224_p12 }
  0x7e   : > { %2234 = shalt.err (!%p2231_p5)
}
  0x7f   : > { %1990 = dma.hbm_to_vmem [thread:$0]  (!%p2504_p6), %s2998_s9, 16, %s451_s12, [#allocation15]  }
  0x80   : > { %s1789_s24 = sadd.s32 4294967294, %s2355_s18   ;;  %s51_s14 = sadd.s32 1, %s2351_s17 }
  0x81   : > { %p53_p8 = scmp.ge.s32.totalorder %s51_s14, 2  ;;  %s88_s26 = sadd.s32 1, %s2343_s15 }
  0x82   : > { %p95_p7 = scmp.ne.s32.totalorder %s2343_s15, %s2339_s30  ;;  %p96_p9 = scmp.eq.s32.totalorder %s2355_s18, 0 }
  0x83   : > { %s3052_s14 = smov (%p53_p8, %s51_s14), 0  ;;  %p101_p1 = scmp.ne.s32.totalorder %s2339_s30, %s2335_s29 }
  0x84   : > { %p2610_p4 = por %p96_p9, %p95_p7  ;;  %s81_s12 = ssub.s32 %s2351_s17, %s3052_s14 }
  0x85   : > { %s3029_s19 = sadd.s32 4294967295, %s2355_s18   ;;  %p86_p3 = scmp.eq.s32.totalorder %s81_s12, 0 }
  0x86   : > { %p379_p6 = scmp.eq.s32.totalorder %s3029_s19, 1  ;;  %p3030_p10 = scmp.ne.s32.totalorder %s3021_s20, 0 }
  0x87   : > { %p385_p13 = scmp.eq.s32.totalorder %s1789_s24, 1  ;;  %p2003_p2 = scmp.lt.s32.totalorder %s2355_s18, 2 }
  0x88   : > { %p2622_p11 = por %p3030_p10, %p101_p1  ;;  %p2626_p12 = por %p379_p6, %p95_p7 }
  0x89   : > { %s2631_s25 = scalar_select %p86_p3, %s2343_s15, %s88_s26  }
  0x8a   : > { %s3032_s23 = scalar_select %p2626_p12, 1, 0 }
  0x8b   : > { %p2633_p0 = por %p385_p13, %p101_p1  ;;  %s480_s28 = sand.u32 1, %s2343_s15  }
  0x8c   : > { %s1797_s10 = sshll.u32 %s2351_s17, 5  ;;  %s1796_s13 = sshll.u32 %s480_s28, 1 }
  0x8d   : > { %s3033_s5 = scalar_select %p2633_p0, 1, 0 }
  0x8e   : > { %s2643_s19 = scalar_lea.hbm %s2990_s1, %s1797_s10  ;;  %s484_s24 = scalar_lea.vmem [#allocation8], %s1796_s13 }
  0x8f   : > { %s493_s26 = sshll.u32 %s484_s24, 4  ;;  %p2647_p5 = pnand %p2003_p2, %p2610_p4  ;;  %s2651_s26 = int_to_ptr.vmem [resolvable:$true] %s493_s26 }
  0x90   : > { %s481_s7 = scalar_lea.sflag [#allocation9], %s480_s28  ;;  %s2235_s8 = scalar_lea.hbm %s2643_s19, 32 }
  0x91   : > { %p2236_p8 = scmp.ne.s32.totalorder %s2643_s19, %s2235_s8  ;;  %p2237_p7 = pneg %p2647_p5 }
  0x92   : > { %s2240_s27 = scalar_lea.hbm %s2990_s1, 64  ;;  %p2241_p4 = scmp.lt.u32.totalorder %s2643_s19, %s2990_s1 }
  0x93   : > { %p2238_p9 = pnand %p2237_p7, %p2236_p8  ;;  %p2242_p6 = scmp.lt.u32.totalorder %s2240_s27, %s2235_s8 }
  0x94   : > { %p2244_p10 = scmp.lt.u32.totalorder %s2235_s8, %s2643_s19 }
  0x95   : > { %p2239_p1 = pneg %p2238_p9  ;;  %p2243_p3 = por %p2242_p6, %p2241_p4 }
  0x97   : > { %p2245_p13 = por %p2244_p10, %p2243_p3 }
  0x99   : > { %p2246_p2 = pnand %p2245_p13, %p2239_p1 }
  0x9b   : > { %2249 = shalt.err (!%p2246_p2)
}
  0x9c   : > { %s2250_s28 = scalar_lea.vmem %s2651_s26, 32  ;;  %s2361_s24 = smov [#allocation8]  }
  0x9d   : > { %p2251_p8 = scmp.ne.s32.totalorder %s2651_s26, %s2250_s28  ;;  %s2255_s10 = sshll.u32 %s2361_s24, 4  ;;  %s2256_s10 = int_to_ptr.vmem [resolvable:$false] %s2255_s10 }
  0x9e   : > { %s2257_s13 = scalar_lea.vmem %s2256_s10, 64  ;;  %p2258_p12 = scmp.lt.s32.totalorder %s2651_s26, %s2256_s10 }
  0x9f   : > { %p2253_p9 = pnand %p2251_p8, %p2237_p7  ;;  %p2259_p4 = scmp.lt.s32.totalorder %s2257_s13, %s2250_s28 }
  0xa1   : > { %p2254_p0 = pneg %p2253_p9  ;;  %p2260_p6 = por %p2259_p4, %p2258_p12 }
  0xa3   : > { %p2261_p3 = pnand %p2260_p6, %p2254_p0 }
  0xa5   : > { %2264 = shalt.err (!%p2261_p3)
}
  0xa6   : > { %1994 = dma.hbm_to_vmem [thread:$0]  (!%p2647_p5), %s2643_s19, 32, %s2651_s26, %s481_s7  }
  0xa7   : > { %p3035_p1 = scmp.ne.s32.totalorder %s3022_s21, 0 }
  0xa8   : > { %s2681_s8 = sand.u32 (!%p3035_p1), 1, %s2339_s30  }
  0xa9   : > { %502 = sbr.rel (%p3035_p1) target bundleno = 2786 (0xae2), region = 76  ;;  %s1799_s27 = sshll.u32 (!%p3035_p1), %s2681_s8, 1 }
  0xaa   : > { %s505_s22 = scalar_lea.sflag (!%p3035_p1), [#allocation9], %s2681_s8  ;;  %s2685_s12 = scalar_lea.vmem (!%p3035_p1), [#allocation8], %s1799_s27 }
  0xb0   : > { %2318 = dma.done.wait (%p2622_p11), %s505_s22, 32  }
  0xb1   : > { %2320 = vsyncadd (%p2622_p11), %s505_s22, 4294967264  ;;  %p3036_p12 = scmp.ne.s32.totalorder %s3021_s20, 0 }
  0xb3   : > { %2322 = dma.done.wait (%p3036_p12), [#allocation12], 32  }
  0xb4   : > { %2324 = vsyncadd (%p3036_p12), [#allocation12], 4294967264 }
  0xb5   : > { %2326 = dma.done.wait (%p3036_p12), [#allocation15], 32  }
  0xb6   : > { %2328 = vsyncadd (%p3036_p12), [#allocation15], 4294967264  ;;  %p573_p0 = scmp.lt.s32.totalorder %s2347_s16, 1  ;;  %vm587_vm0 = vcmask 261120   ;;  %v2081_v7 = vld [vmem:[%s2991_s2] sm:$0xff]   ;;  %v2362_v8 = vmov 0.0  }
  0xb7   : > { %1874 = vmatprep.subr.bf16.mxu0 %v2362_v8  ;;  %vm2363_vm1 = vmmov 0   ;;  %v2082_v9 = vld [vmem:[%s2991_s2 + $0x8] sm:$0xff]   ;;  %1882 = vmatprep.subr.bf16.mxu1 %v2362_v8  ;;  %v1806_v19 = vld [vmem:[#allocation11] ss:$0 sm:$0xff]  ;;  %v1807_v21 = vld [vmem:[#allocation13] ss:$0 sm:$0xff] }
  0xb8   : > { %s574_s6 = scalar_select %p573_p0, %s2347_s16, 1  ;;  %1878 = vmatprep.mubr.msk.bf16.mxu0 %vm2363_vm1, %v2362_v8  ;;  %1875 = vmatpush3.bf16.msra.mxu0 %v2081_v7  ;;  %v1808_v25 = vld [vmem:[%s2992_s3] ss:$0 sm:$0xff]  ;;  %vm766_vm4 = vcmask 64512   ;;  %vm692_vm5 = vcmask 60416   ;;  %vm757_vm6 = vcmask 7168  }
  0xb9   : > { %1876 = vmatprep.subr.bf16.mxu0 %v2362_v8  ;;  %1884 = vmatprep.mubr.msk.bf16.mxu1 %vm2363_vm1, %v2362_v8  ;;  %767 = vst.msk [vmem:[#allocation7] sm:$0xff] %vm766_vm4, %v2362_v8  ;;  %768 = vst.msk [vmem:[#allocation7 + $0x8] sm:$0xff] %vm766_vm4, %v2362_v8  ;;  %s2364_s27 = smov 80   ;;  %s2365_s22 = smov 96   ;;  %v2371_v53 = vmov -inf   ;;  %vm1113_vm8 = vcmask 1043456  }
  0xba   : > { %s1805_s7 = sshll.u32 %s574_s6, 3  ;;  %769 = vst.msk [vmem:[#allocation7 + $0x10] sm:$0xff] %vm766_vm4, %v2362_v8  ;;  %770 = vst.msk [vmem:[#allocation7 + $0x18] sm:$0xff] %vm766_vm4, %v2362_v8  ;;  %s2366_s6 = smov 88   ;;  %v795_v54 = vld [vmem:[%s2685_s12] sm:$0x3] }
  0xbb   : > { %s576_s19 = scalar_lea.vmem %s2989_s0, %s1805_s7  ;;  %s2367_s7 = smov 72   ;;  %758 = vst.msk [vmem:[#allocation5] sm:$0xff] %vm757_vm6, %v2371_v53  ;;  %759 = vst.msk [vmem:[#allocation5 + $0x8] sm:$0xff] %vm757_vm6, %v2371_v53  ;;  %v796_v55 = vunpack.c.0.s8 %v795_v54  ;;  %vm1365_vm9 = vcmask 130048   ;;  %vm1368_vm10 = vcmask 195584   ;;  %vm1585_vm13 = vcmask 523264  }
  0xbc   : > { %v2704_v0 = vld [vmem:[%s576_s19] sm:$0xff]  ;;  %1877 = vmatpush3.bf16.msra.mxu0 %v2082_v9  ;;  %s2368_s21 = smov 120   ;;  %s2369_s11 = smov 112   ;;  %760 = vst.msk [vmem:[#allocation5 + $0x10] sm:$0xff] %vm757_vm6, %v2371_v53  ;;  %761 = vst.msk [vmem:[#allocation5 + $0x18] sm:$0xff] %vm757_vm6, %v2371_v53 }
  0xbd   : > { %v588_v1 = vsel %vm587_vm0, %v2704_v0, 0.0  ;;  %1888 = vmatprep.subr.bf16.mxu0 %v2362_v8  ;;  %s2370_s19 = smov 104   ;;  %762 = vst.msk [vmem:[#allocation6] sm:$0xff] %vm757_vm6, %v2362_v8  ;;  %763 = vst.msk [vmem:[#allocation6 + $0x8] sm:$0xff] %vm757_vm6, %v2362_v8  ;;  %v797_v56 = vcvt.s32.f32 %v796_v55  ;;  %s2373_s12 = smov 64  }
  0xbe   : > { %589 = vadd.xlane.f32.xlu0 %v588_v1  ;;  %764 = vst.msk [vmem:[#allocation6 + $0x10] sm:$0xff] %vm757_vm6, %v2362_v8  ;;  %765 = vst.msk [vmem:[#allocation6 + $0x18] sm:$0xff] %vm757_vm6, %v2362_v8  ;;  %s2374_s20 = smov 56   ;;  %s2375_s26 = smov 48  }
  0xbf   : > { %vm798_vm7 = vcmp.eq.f32.partialorder %v797_v56, 0.0  ;;  %s2376_s28 = smov 40   ;;  %s1804_s24 = sshll.u32 %s2681_s8, 3 }
  0xc0   : > { %v799_v57 = vsel %vm798_vm7, -1e+09, %v2362_v8  ;;  %p3043_p5 = scmp.ne.s32.totalorder %s3032_s23, 0 }
 0x14b   : > { %v590_v2 = vpop.xlane.xlu0 %589 }
 0x14c   : > { %v592_v3 = vmul.f32 0.03125, %v590_v2 }
 0x14e   : > { %v593_v4 = vsub.f32 %v2704_v0, %v592_v3 }
 0x150   : > { %v594_v5 = vmul.f32 %v593_v4, %v593_v4 }
 0x152   : > { %v595_v6 = vsel %vm587_vm0, %v594_v5, 0.0 }
 0x153   : > { %596 = vadd.xlane.f32.xlu0 %v595_v6 }
 0x1e0   : > { %v597_v10 = vpop.xlane.xlu0 %596 }
 0x1e1   : > { %v598_v11 = vmul.f32 0.032258064, %v597_v10 }
 0x1e3   : > { %2091 = vrsqrt.f32 %v598_v11  ;;  %vm601_vm2 = vcmp.eq.f32.partialorder %v598_v11, inf  ;;  %v604_v14 = vand.u32 2147483648, %v598_v11  ;;  %vm603_vm3 = vcmp.eq.f32.partialorder %v598_v11, 0.0 }
 0x1ed   : > { %v2092_v12 = vpop.eup %2091 }
 0x1ee   : > { %v600_v13 = vmul.f32 %v2092_v12, %v598_v11 }
 0x1f0   : > { %v602_v15 = vsel %vm601_vm2, %v598_v11, %v600_v13 }
 0x1f1   : > { %v605_v16 = vsel %vm603_vm3, %v604_v14, %v602_v15 }
 0x1f2   : > { %v606_v17 = vadd.f32 1e-06, %v605_v16 }
 0x1f4   : > { %2093 = vrcp.f32 %v606_v17 }
 0x1fe   : > { %v2094_v18 = vpop.eup %2093 }
 0x1ff   : > { %v608_v20 = vmul.f32 %v2094_v18, %v593_v4 }
 0x201   : > { %v615_v22 = vmul.f32 %v1806_v19, %v608_v20  ;;  %v2372_v20 = vmov 0  }
 0x202   : > { %2079 = vset.pattern.permute.xlu1 %v2372_v20  ;;  %2080 = vset.pattern.permute.xlu0 %v2372_v20 }
 0x203   : > { %v622_v23 = vadd.f32 %v1807_v21, %v615_v22  ;;  %v2796_v21 = vld [vmem:[#allocation5] sm:$0xff] }
 0x205   : > { %v623_v24 = vpack.c.bf16 %v622_v23, %v622_v23 }
 0x207   : > { %1879 = vmatmul.mubr.msk.bf16.vlgmr.msra.gmra.mrb[0].mxu0 %vm587_vm0, %v623_v24  ;;  %v2801_v24 = vld [vmem:[#allocation5 + $0x8] sm:$0xff] }
 0x208   : > { %1890 = vmatprep.mubr.msk.bf16.mxu0 %vm2363_vm1, %v2362_v8 }
 0x2da   : > { %v684_v26 = vpop.f32.mrb[0].mxu0 }
 0x2db   : > { %v685_v27 = vadd.f32 %v1808_v25, %v684_v26  ;;  %v1880_v28 = vpop.f32.mrb[1].mxu0 }
 0x2dc   : > { %v687_v29 = vpop.f32.mrb[2].mxu0  ;;  %v2811_v28 = vld [vmem:[#allocation5 + $0x10] sm:$0xff] }
 0x2dd   : > { %v690_v30 = vmul.f32 0.35355338, %v685_v27  ;;  %v2738_v31 = vpack.c.bf16 %v685_v27, %v685_v27  ;;  %v1881_v32 = vpop.f32.mrb[3].mxu0 }
 0x2df   : > { %v691_v33 = vpack.c.bf16 %v690_v30, %v690_v30  ;;  %729 = vrot.lane.b32.xlu0 %v2738_v31, %s2364_s27  ;;  %698 = vrot.lane.b32.xlu1 %v2738_v31, %s2365_s22  ;;  %s2377_s22 = smov 8   ;;  %s3039_s27 = sld [smem:[#allocation28_spill]] }
 0x2e1   : > { %693 = vst.msk [vmem:[#allocation2] sm:$0xf] %vm692_vm5, %v691_v33 }
 0x2e3   : > { %714 = vrot.lane.b32.xlu1 %v2738_v31, %s2366_s6  ;;  %s2378_s6 = smov 16  }
 0x2e7   : > { %744 = vrot.lane.b32.xlu1 %v2738_v31, %s2367_s7  ;;  %s2379_s7 = smov 24  }
 0x2e8   : > { %v777_v45 = vld [vmem:[#allocation2] sm:$0xf] }
 0x2eb   : > { %709 = vrot.lane.b32.xlu1 %v691_v33, %s2368_s21 }
 0x2ef   : > { %724 = vrot.lane.b32.xlu1 %v691_v33, %s2369_s11 }
 0x2f3   : > { %739 = vrot.lane.b32.xlu1 %v691_v33, %s2370_s19  ;;  %v2820_v33 = vld [vmem:[#allocation5 + $0x18] sm:$0xff]  ;;  %s3037_s19 = sld [smem:[#allocation22_spill]] }
 0x351   : > { %v730_v34 = vpop.permute.xlu0 %729  ;;  %v699_v35 = vpop.permute.xlu1 %698 }
 0x352   : > { %733 = vst.msk [vmem:[#allocation3 + $0x8] sm:$0xf] %vm692_vm5, %v730_v34  ;;  %701 = vst.msk [vmem:[#allocation3] sm:$0xf] %vm692_vm5, %v699_v35 }
 0x355   : > { %v715_v36 = vpop.permute.xlu1 %714 }
 0x356   : > { %718 = vst.msk [vmem:[#allocation3 + $0x4] sm:$0xf] %vm692_vm5, %v715_v36 }
 0x359   : > { %v745_v37 = vpop.permute.xlu1 %744  ;;  %v785_v38 = vld [vmem:[#allocation3] sm:$0xf]  ;;  %v787_v43 = vld [vmem:[#allocation3 + $0x8] sm:$0xf] }
 0x35a   : > { %748 = vst.msk [vmem:[#allocation3 + $0xc] sm:$0xf] %vm692_vm5, %v745_v37  ;;  %v805_v39 = vsel %vm766_vm4, %v785_v38, 0  ;;  %v897_v46 = vsel %vm766_vm4, %v787_v43, 0 }
 0x35b   : > { %1883 = vmatpush3.bf16.xpose.msra.mxu1 %v805_v39 }
 0x35c   : > { %1894 = vmatprep.subr.bf16.mxu1 %v2362_v8 }
 0x35d   : > { %v710_v40 = vpop.permute.xlu1 %709  ;;  %v786_v41 = vld [vmem:[#allocation3 + $0x4] sm:$0xf] }
 0x35e   : > { %713 = vst.msk [vmem:[#allocation2 + $0x4] sm:$0xf] %vm692_vm5, %v710_v40  ;;  %v851_v42 = vsel %vm766_vm4, %v786_v41, 0 }
 0x35f   : > { %1889 = vmatpush3.bf16.xpose.msra.mxu0 %v851_v42 }
 0x360   : > { %1900 = vmatprep.subr.bf16.mxu0 %v2362_v8 }
 0x361   : > { %v725_v44 = vpop.permute.xlu1 %724  ;;  %v788_v47 = vld [vmem:[#allocation3 + $0xc] sm:$0xf] }
 0x362   : > { %728 = vst.msk [vmem:[#allocation2 + $0x8] sm:$0xf] %vm692_vm5, %v725_v44  ;;  %1885 = vmatmul.mubr.msk.bf16.vlgmr.msra.gmra.mrb[0].mxu1 %vm766_vm4, %v777_v45  ;;  %v943_v50 = vsel %vm766_vm4, %v788_v47, 0 }
 0x363   : > { %1895 = vmatpush3.bf16.xpose.msra.mxu1 %v897_v46  ;;  %1896 = vmatprep.mubr.msk.bf16.mxu1 %vm2363_vm1, %v2362_v8 }
 0x364   : > { %1906 = vmatprep.subr.bf16.mxu1 %v2362_v8 }
 0x365   : > { %v740_v48 = vpop.permute.xlu1 %739  ;;  %v778_v49 = vld [vmem:[#allocation2 + $0x4] sm:$0xf] }
 0x366   : > { %743 = vst.msk [vmem:[#allocation2 + $0xc] sm:$0xf] %vm692_vm5, %v740_v48  ;;  %1891 = vmatmul.mubr.msk.bf16.vlgmr.msra.gmra.mrb[4].mxu0 %vm766_vm4, %v778_v49 }
 0x367   : > { %1901 = vmatpush3.bf16.xpose.msra.mxu0 %v943_v50  ;;  %1902 = vmatprep.mubr.msk.bf16.mxu0 %vm2363_vm1, %v2362_v8 }
 0x368   : > { %1912 = vmatprep.subr.bf16.mxu0 %v2362_v8 }
 0x369   : > { %v779_v51 = vld [vmem:[#allocation2 + $0x8] sm:$0xf] }
 0x36a   : > { %1897 = vmatmul.mubr.msk.bf16.vlgmr.msra.gmra.mrb[4].mxu1 %vm766_vm4, %v779_v51 }
 0x36b   : > { %1908 = vmatprep.mubr.msk.bf16.mxu1 %vm2363_vm1, %v2362_v8 }
 0x36d   : > { %v780_v52 = vld [vmem:[#allocation2 + $0xc] sm:$0xf] }
 0x36e   : > { %1903 = vmatmul.mubr.msk.bf16.vlgmr.msra.gmra.mrb[8].mxu0 %vm766_vm4, %v780_v52 }
 0x36f   : > { %1914 = vmatprep.mubr.msk.bf16.mxu0 %vm2363_vm1, %v2362_v8 }
 0x435   : > { %v841_v58 = vpop.f32.mrb[0].mxu1 }
 0x436   : > { %v2786_v59 = vadd.f32 %v841_v58, %v799_v57  ;;  %v1886_v60 = vpop.f32.mrb[1].mxu1 }
 0x437   : > { %v844_v61 = vpop.f32.mrb[2].mxu1 }
 0x438   : > { %v1887_v62 = vpop.f32.mrb[3].mxu1  ;;  %v989_v63 = vsel %vm766_vm4, %v2786_v59, -inf }
 0x439   : > { %990 = vmax.xlane.f32.xlu1 %v989_v63  ;;  %v887_v1 = vpop.f32.mrb[4].mxu0 }
 0x43a   : > { %v2790_v2 = vadd.f32 %v887_v1, %v799_v57  ;;  %v1892_v3 = vpop.f32.mrb[5].mxu0 }
 0x43b   : > { %v890_v4 = vpop.f32.mrb[6].mxu0 }
 0x43c   : > { %v1893_v5 = vpop.f32.mrb[7].mxu0  ;;  %v992_v6 = vsel %vm766_vm4, %v2790_v2, -inf }
 0x43d   : > { %v933_v7 = vpop.f32.mrb[4].mxu1  ;;  %993 = vmax.xlane.f32.xlu0 %v992_v6 }
 0x43e   : > { %v934_v9 = vadd.f32 %v933_v7, %v799_v57  ;;  %v1898_v10 = vpop.f32.mrb[5].mxu1 }
 0x43f   : > { %v936_v11 = vpop.f32.mrb[6].mxu1 }
 0x440   : > { %v1899_v12 = vpop.f32.mrb[7].mxu1  ;;  %v995_v13 = vsel %vm766_vm4, %v934_v9, -inf }
 0x441   : > { %996 = vmax.xlane.f32.xlu1 %v995_v13  ;;  %v979_v14 = vpop.f32.mrb[8].mxu0 }
 0x442   : > { %v980_v15 = vadd.f32 %v979_v14, %v799_v57  ;;  %v1904_v16 = vpop.f32.mrb[9].mxu0 }
 0x443   : > { %v982_v17 = vpop.f32.mrb[10].mxu0 }
 0x444   : > { %v1905_v18 = vpop.f32.mrb[11].mxu0  ;;  %v998_v19 = vsel %vm766_vm4, %v980_v15, -inf }
 0x445   : > { %999 = vmax.xlane.f32.xlu0 %v998_v19  ;;  %v1050_v18 = vld [vmem:[#allocation6 + $0x8] sm:$0xff] }
 0x4c6   : > { %v991_v22 = vpop.xlane.xlu1 %990 }
 0x4c7   : > { %v2799_v23 = vmax.f32 %v2796_v21, %v991_v22 }
 0x4c9   : > { %v1005_v25 = vsub.f32 %v2796_v21, %v2799_v23  ;;  %1303 = vst.msk [vmem:[#allocation5] sm:$0xff] %vm757_vm6, %v2799_v23  ;;  %1019 = vperm.xlu1 %2079, %v2799_v23  }
 0x4ca   : > { %v994_v26 = vpop.xlane.xlu0 %993 }
 0x4cb   : > { %v2809_v27 = vmax.f32 %v2801_v24, %v994_v26  ;;  %v1009_v17 = vmul.f32 1.442695, %v1005_v25  ;;  %v1051_v26 = vld [vmem:[#allocation6 + $0x10] sm:$0xff] }
 0x4cd   : > { %v1006_v29 = vsub.f32 %v2801_v24, %v2809_v27  ;;  %1304 = vst.msk [vmem:[#allocation5 + $0x8] sm:$0xff] %vm757_vm6, %v2809_v27  ;;  %702 = vrot.lane.b32.xlu1 %v2738_v31, %s2373_s12  ;;  %1024 = vperm.xlu0 %2080, %v2809_v27   ;;  %v1049_v24 = vld [vmem:[#allocation6] sm:$0xff]  ;;  %s3042_s12 = sld [smem:[#allocation30_spill]] }
 0x4ce   : > { %v997_v30 = vpop.xlane.xlu1 %996 }
 0x4cf   : > { %v1003_v32 = vmax.f32 %v2811_v28, %v997_v30  ;;  %v1011_v13 = vmul.f32 1.442695, %v1006_v29 }
 0x4d1   : > { %v1007_v34 = vsub.f32 %v2811_v28, %v1003_v32  ;;  %1305 = vst.msk [vmem:[#allocation5 + $0x10] sm:$0xff] %vm757_vm6, %v1003_v32  ;;  %1029 = vperm.xlu1 %2079, %v1003_v32  }
 0x4d2   : > { %v1000_v35 = vpop.xlane.xlu0 %999 }
 0x4d3   : > { %v2825_v36 = vmax.f32 %v2820_v33, %v1000_v35 }
 0x4d5   : > { %v1008_v37 = vsub.f32 %v2820_v33, %v2825_v36  ;;  %1306 = vst.msk [vmem:[#allocation5 + $0x18] sm:$0xff] %vm757_vm6, %v2825_v36  ;;  %1034 = vperm.xlu1 %2079, %v2825_v36   ;;  %v1052_v33 = vld [vmem:[#allocation6 + $0x18] sm:$0xff] }
 0x4d7   : > { %v1015_v7 = vmul.f32 1.442695, %v1008_v37 }
 0x4d9   : > { %719 = vrot.lane.b32.xlu1 %v2738_v31, %s2374_s20 }
 0x4dd   : > { %734 = vrot.lane.b32.xlu1 %v2738_v31, %s2375_s26  ;;  %s3038_s26 = sld [smem:[#allocation26_spill]] }
 0x4e1   : > { %749 = vrot.lane.b32.xlu1 %v2738_v31, %s2376_s28  ;;  %s3040_s28 = sld [smem:[#allocation27_spill]] }
 0x548   : > { %v1020_v38 = vpop.permute.xlu1 %1019 }
 0x549   : > { %v1037_v39 = vsub.f32 %v2786_v59, %v1020_v38 }
 0x54b   : > { %v1041_v40 = vmul.f32 1.442695, %v1037_v39 }
 0x54c   : > { %v703_v41 = vpop.permute.xlu1 %702  ;;  %v1025_v42 = vpop.permute.xlu0 %1024 }
 0x54d   : > { %2095 = vpow2.f32 %v1041_v40  ;;  %705 = vst.msk [vmem:[#allocation4] sm:$0xf] %vm692_vm5, %v703_v41  ;;  %v1038_v43 = vsub.f32 %v2790_v2, %v1025_v42  ;;  %v1013_v2 = vmul.f32 1.442695, %v1007_v34 }
 0x54f   : > { %v1043_v44 = vmul.f32 1.442695, %v1038_v43 }
 0x550   : > { %v1030_v45 = vpop.permute.xlu1 %1029 }
 0x551   : > { %2097 = vpow2.f32 %v1043_v44  ;;  %v1039_v46 = vsub.f32 %v934_v9, %v1030_v45 }
 0x553   : > { %v1045_v47 = vmul.f32 1.442695, %v1039_v46 }
 0x554   : > { %v1035_v48 = vpop.permute.xlu1 %1034  ;;  %v791_v49 = vld [vmem:[#allocation4] sm:$0xf] }
 0x555   : > { %2099 = vpow2.f32 %v1045_v47  ;;  %v1040_v31 = vsub.f32 %v980_v15, %v1035_v48  ;;  %v1115_v50 = vsel %vm1113_vm8, %v791_v49, 0  ;;  %v1079_v48 = vld [vmem:[#allocation7 + $0x8] sm:$0xff] }
 0x556   : > { %1907 = vmatpush3.bf16.msra.mxu1 %v1115_v50 }
 0x557   : > { %v2096_v51 = vpop.eup %2095  ;;  %v1047_v52 = vmul.f32 1.442695, %v1040_v31  ;;  %1918 = vmatprep.subr.bf16.mxu1 %v2362_v8 }
 0x558   : > { %v720_v53 = vpop.permute.xlu1 %719  ;;  %v1106_v54 = vpack.c.bf16 %v2096_v51, %v2096_v51  ;;  %v1057_v61 = vsel %vm766_vm4, %v2096_v51, 0.0  ;;  %v1080_v51 = vld [vmem:[#allocation7 + $0x10] sm:$0xff] }
 0x559   : > { %2101 = vpow2.f32 %v1047_v52  ;;  %723 = vst.msk [vmem:[#allocation4 + $0x4] sm:$0xf] %vm692_vm5, %v720_v53 }
 0x55a   : > { %1909 = vmatmul.mubr.msk.bf16.vlgmr.msra.gmra.mrb[8].mxu1 %vm766_vm4, %v1106_v54  ;;  %2103 = vpow2.f32 %v1013_v2 }
 0x55b   : > { %v2098_v55 = vpop.eup %2097  ;;  %1920 = vmatprep.mubr.msk.bf16.mxu1 %vm2363_vm1, %v2362_v8  ;;  %2105 = vpow2.f32 %v1015_v7 }
 0x55c   : > { %v735_v56 = vpop.permute.xlu1 %734  ;;  %v1060_v57 = vsel %vm766_vm4, %v2098_v55, 0.0  ;;  %v1107_v3 = vpack.c.bf16 %v2098_v55, %v2098_v55  ;;  %2107 = vpow2.f32 %v1011_v13 }
 0x55d   : > { %738 = vst.msk [vmem:[#allocation4 + $0x8] sm:$0xf] %vm692_vm5, %v735_v56  ;;  %1061 = vadd.xlane.f32.xlu1 %v1060_v57  ;;  %2109 = vpow2.f32 %v1009_v17 }
 0x55f   : > { %v2100_v58 = vpop.eup %2099 }
 0x560   : > { %v750_v59 = vpop.permute.xlu1 %749  ;;  %v1063_v60 = vsel %vm766_vm4, %v2100_v58, 0.0  ;;  %v792_v62 = vld [vmem:[#allocation4 + $0x4] sm:$0xf]  ;;  %v1108_v9 = vpack.c.bf16 %v2100_v58, %v2100_v58  ;;  %v1081_v58 = vld [vmem:[#allocation7 + $0x18] sm:$0xff] }
 0x561   : > { %753 = vst.msk [vmem:[#allocation4 + $0xc] sm:$0xf] %vm692_vm5, %v750_v59  ;;  %1064 = vadd.xlane.f32.xlu0 %v1063_v60  ;;  %1058 = vadd.xlane.f32.xlu1 %v1057_v61  ;;  %v1161_v63 = vsel %vm1113_vm8, %v792_v62, 0 }
 0x562   : > { %1913 = vmatpush3.bf16.msra.mxu0 %v1161_v63 }
 0x563   : > { %v2102_v1 = vpop.eup %2101  ;;  %1924 = vmatprep.subr.bf16.mxu0 %v2362_v8 }
 0x564   : > { %v1066_v4 = vsel %vm766_vm4, %v2102_v1, 0.0  ;;  %v793_v5 = vld [vmem:[#allocation4 + $0x8] sm:$0xf]  ;;  %v1109_v12 = vpack.c.bf16 %v2102_v1, %v2102_v1  ;;  %v2104_v14 = vpop.eup %2103 }
 0x565   : > { %1067 = vadd.xlane.f32.xlu0 %v1066_v4  ;;  %1915 = vmatmul.mubr.msk.bf16.vlgmr.msra.gmra.mrb[12].mxu0 %vm766_vm4, %v1107_v3  ;;  %v1207_v6 = vsel %vm1113_vm8, %v793_v5, 0  ;;  %v2106_v15 = vpop.eup %2105  ;;  %v1055_v29 = vmul.f32 %v2104_v14, %v1051_v26 }
 0x566   : > { %1919 = vmatpush3.bf16.msra.mxu1 %v1207_v6  ;;  %1926 = vmatprep.mubr.msk.bf16.mxu0 %vm2363_vm1, %v2362_v8  ;;  %v2108_v16 = vpop.eup %2107  ;;  %v1056_v21 = vmul.f32 %v2106_v15, %v1052_v33 }
 0x567   : > { %1930 = vmatprep.subr.bf16.mxu1 %v2362_v8  ;;  %v1054_v19 = vmul.f32 %v2108_v16, %v1050_v18  ;;  %v2110_v20 = vpop.eup %2109  ;;  %v1078_v18 = vld [vmem:[#allocation7] sm:$0xff] }
 0x568   : > { %v794_v10 = vld [vmem:[#allocation4 + $0xc] sm:$0xf]  ;;  %v1053_v28 = vmul.f32 %v2110_v20, %v1049_v24 }
 0x569   : > { %1921 = vmatmul.mubr.msk.bf16.vlgmr.msra.gmra.mrb[12].mxu1 %vm766_vm4, %v1108_v9  ;;  %v1253_v11 = vsel %vm1113_vm8, %v794_v10, 0  ;;  %v2083_v9 = vld [vmem:[%s2993_s4] sm:$0xff]   ;;  %v2084_v10 = vld [vmem:[%s2993_s4 + $0x8] sm:$0xff]  }
 0x56a   : > { %1925 = vmatpush3.bf16.msra.mxu0 %v1253_v11  ;;  %1934 = vmatprep.mubr.msk.bf16.mxu1 %vm2363_vm1, %v2362_v8 }
 0x56b   : > { %1938 = vmatprep.subr.bf16.mxu0 %v2362_v8  ;;  %1931 = vmatpush3.bf16.msra.mxu1 %v2083_v9 }
 0x56c   : > { %1932 = vmatprep.subr.bf16.mxu1 %v2362_v8 }
 0x56d   : > { %1927 = vmatmul.mubr.msk.bf16.vlgmr.msra.gmra.mrb[16].mxu0 %vm766_vm4, %v1109_v12 }
 0x56e   : > { %1942 = vmatprep.mubr.msk.bf16.mxu0 %vm2363_vm1, %v2362_v8 }
 0x56f   : > { %1933 = vmatpush3.bf16.msra.mxu1 %v2084_v10 }
 0x570   : > { %1946 = vmatprep.subr.bf16.mxu1 %v2362_v8 }
 0x572   : > { %1094 = vperm.xlu1 %2079, %v2104_v14  }
 0x576   : > { %1099 = vperm.xlu1 %2079, %v2106_v15  }
 0x57b   : > { %1089 = vperm.xlu0 %2080, %v2108_v16  }
 0x5ea   : > { %v1062_v22 = vpop.xlane.xlu1 %1061 }
 0x5eb   : > { %v1070_v27 = vadd.f32 %v1062_v22, %v1054_v19 }
 0x5ed   : > { %1075 = vst.msk [vmem:[#allocation6 + $0x8] sm:$0xff] %vm757_vm6, %v1070_v27 }
 0x5ee   : > { %v1059_v30 = vpop.xlane.xlu1 %1058  ;;  %v1065_v32 = vpop.xlane.xlu0 %1064 }
 0x5ef   : > { %v1069_v34 = vadd.f32 %v1059_v30, %v1053_v28  ;;  %v1071_v35 = vadd.f32 %v1065_v32, %v1055_v29 }
 0x5f1   : > { %1074 = vst.msk [vmem:[#allocation6] sm:$0xff] %vm757_vm6, %v1069_v34  ;;  %1076 = vst.msk [vmem:[#allocation6 + $0x10] sm:$0xff] %vm757_vm6, %v1071_v35 }
 0x5f2   : > { %v1068_v23 = vpop.xlane.xlu0 %1067  ;;  %v1095_v31 = vpop.permute.xlu1 %1094 }
 0x5f3   : > { %v1072_v25 = vadd.f32 %v1068_v23, %v1056_v21  ;;  %v1104_v56 = vmul.f32 %v1095_v31, %v1080_v51  ;;  %v2087_v51 = vld [vmem:[%s3039_s27] sm:$0xff]  }
 0x5f4   : > { %v1311_v36 = vld [vmem:[#allocation6 + $0x8] sm:$0xff] }
 0x5f5   : > { %1077 = vst.msk [vmem:[#allocation6 + $0x18] sm:$0xff] %vm757_vm6, %v1072_v25  ;;  %2111 = vrcp.f32 %v1311_v36 }
 0x5f6   : > { %v1100_v59 = vpop.permute.xlu1 %1099 }
 0x5f7   : > { %v1105_v1 = vmul.f32 %v1100_v59, %v1081_v58 }
 0x5f8   : > { %v1312_v37 = vld [vmem:[#allocation6 + $0x10] sm:$0xff]  ;;  %v1310_v39 = vld [vmem:[#allocation6] sm:$0xff] }
 0x5f9   : > { %2113 = vrcp.f32 %v1312_v37 }
 0x5fa   : > { %v1090_v49 = vpop.permute.xlu0 %1089 }
 0x5fb   : > { %v1103_v50 = vmul.f32 %v1090_v49, %v1079_v48 }
 0x5fc   : > { %v1313_v38 = vld [vmem:[#allocation6 + $0x18] sm:$0xff] }
 0x5fd   : > { %2115 = vrcp.f32 %v1313_v38  ;;  %v1822_v38 = vld [vmem:[%s3037_s19] ss:$0 sm:$0xff] }
 0x5fe   : > { %2117 = vrcp.f32 %v1310_v39 }
 0x5ff   : > { %v2112_v40 = vpop.eup %2111 }
 0x600   : > { %1330 = vperm.xlu0 %2080, %v2112_v40  }
 0x603   : > { %v2114_v41 = vpop.eup %2113 }
 0x604   : > { %1339 = vperm.xlu1 %2079, %v2114_v41  }
 0x607   : > { %v2116_v42 = vpop.eup %2115 }
 0x608   : > { %1084 = vperm.xlu1 %2079, %v2110_v20   ;;  %1348 = vperm.xlu0 %2080, %v2116_v42   ;;  %v2118_v43 = vpop.eup %2117 }
 0x60c   : > { %1321 = vperm.xlu0 %2080, %v2118_v43  }
 0x62d   : > { %v1151_v44 = vpop.f32.mrb[8].mxu1 }
 0x62e   : > { %v1910_v45 = vpop.f32.mrb[9].mxu1 }
 0x62f   : > { %v1154_v46 = vpop.f32.mrb[10].mxu1 }
 0x630   : > { %v1911_v47 = vpop.f32.mrb[11].mxu1 }
 0x638   : > { %v1197_v52 = vpop.f32.mrb[12].mxu0 }
 0x639   : > { %v1296_v53 = vadd.f32 %v1197_v52, %v1103_v50  ;;  %v1916_v54 = vpop.f32.mrb[13].mxu0  ;;  %v2085_v50 = vld [vmem:[%s3038_s26] sm:$0xff]   ;;  %v2088_v52 = vld [vmem:[%s3039_s27 + $0x8] sm:$0xff]  }
 0x63a   : > { %v1200_v55 = vpop.f32.mrb[14].mxu0  ;;  %1939 = vmatpush3.bf16.msra.mxu0 %v2085_v50 }
 0x63b   : > { %1300 = vst.msk [vmem:[#allocation7 + $0x8] sm:$0xff] %vm766_vm4, %v1296_v53  ;;  %v1917_v57 = vpop.f32.mrb[15].mxu0  ;;  %1940 = vmatprep.subr.bf16.mxu0 %v2362_v8 }
 0x63c   : > { %v1243_v60 = vpop.f32.mrb[12].mxu1 }
 0x63d   : > { %v1297_v61 = vadd.f32 %v1243_v60, %v1104_v56  ;;  %v1922_v62 = vpop.f32.mrb[13].mxu1 }
 0x63e   : > { %v1246_v63 = vpop.f32.mrb[14].mxu1  ;;  %v1826_v62 = vld [vmem:[#allocation14] ss:$0 sm:$0xff] }
 0x63f   : > { %1301 = vst.msk [vmem:[#allocation7 + $0x10] sm:$0xff] %vm766_vm4, %v1297_v61  ;;  %v1923_v2 = vpop.f32.mrb[15].mxu1 }
 0x640   : > { %v1289_v3 = vpop.f32.mrb[16].mxu0 }
 0x641   : > { %v1298_v4 = vadd.f32 %v1289_v3, %v1105_v1  ;;  %v1928_v5 = vpop.f32.mrb[17].mxu0  ;;  %v1827_v1 = vld [vmem:[#allocation16] ss:$0 sm:$0xff] }
 0x642   : > { %v1292_v6 = vpop.f32.mrb[18].mxu0  ;;  %v1327_v12 = vld [vmem:[#allocation7 + $0x8] sm:$0xff]  ;;  %v2089_v5 = vld [vmem:[%s3039_s27 + $0x10] sm:$0xff]  }
 0x643   : > { %1302 = vst.msk [vmem:[#allocation7 + $0x18] sm:$0xff] %vm766_vm4, %v1298_v4  ;;  %v1929_v7 = vpop.f32.mrb[19].mxu0  ;;  %v2090_v6 = vld [vmem:[%s3039_s27 + $0x18] sm:$0xff]  }
 0x644   : > { %v1828_v7 = vld [vmem:[%s3040_s28] ss:$0 sm:$0xff] }
 0x646   : > { %v1336_v15 = vld [vmem:[#allocation7 + $0x10] sm:$0xff] }
 0x64a   : > { %v1345_v24 = vld [vmem:[#allocation7 + $0x18] sm:$0xff] }
 0x67f   : > { %v1331_v11 = vpop.permute.xlu0 %1330 }
 0x680   : > { %v1333_v13 = vmul.f32 %v1331_v11, %v1327_v12 }
 0x682   : > { %v1334_v14 = vpack.c.bf16 %v1333_v13, %v1333_v13 }
 0x683   : > { %v1340_v16 = vpop.permute.xlu1 %1339 }
 0x684   : > { %v1342_v17 = vmul.f32 %v1340_v16, %v1336_v15  ;;  %1354 = vrot.lane.b32.xlu1 %v1334_v14, %s2377_s22  ;;  %s3041_s22 = sld [smem:[#allocation29_spill]] }
 0x686   : > { %v1343_v19 = vpack.c.bf16 %v1342_v17, %v1342_v17 }
 0x687   : > { %v1085_v20 = vpop.permute.xlu1 %1084  ;;  %v1349_v22 = vpop.permute.xlu0 %1348 }
 0x688   : > { %v1102_v26 = vmul.f32 %v1085_v20, %v1078_v18  ;;  %v1351_v27 = vmul.f32 %v1349_v22, %v1345_v24  ;;  %1357 = vrot.lane.b32.xlu0 %v1343_v19, %s2378_s6  ;;  %s1839_s6 = sshll.u32 %s2347_s16, 7  ;;  %s1632_s16 = scalar_lea.sflag [#allocation10], %s2681_s8 }
 0x689   : > { %s2939_s20 = scalar_lea.hbm %s3042_s12, %s1839_s6 }
 0x68a   : > { %v1295_v28 = vadd.f32 %v1151_v44, %v1102_v26  ;;  %v1352_v29 = vpack.c.bf16 %v1351_v27, %v1351_v27 }
 0x68b   : > { %v1322_v32 = vpop.permute.xlu0 %1321 }
 0x68c   : > { %1299 = vst.msk [vmem:[#allocation7] sm:$0xff] %vm766_vm4, %v1295_v28  ;;  %1360 = vrot.lane.b32.xlu1 %v1352_v29, %s2379_s7  ;;  %s572_s7 = scalar_lea.vmem [#allocation17], %s1804_s24  ;;  %s2380_s24 = smov [#allocation17]  }
 0x68d   : > { %s1646_s21 = sshll.u32 %s572_s7, 4  ;;  %s2269_s10 = sshll.u32 %s2380_s24, 4  ;;  %s2941_s21 = int_to_ptr.vmem [resolvable:$true] %s1646_s21  ;;  %s2270_s10 = int_to_ptr.vmem [resolvable:$false] %s2269_s10 }
 0x68e   : > { %s2265_s28 = scalar_lea.vmem %s2941_s21, 128  ;;  %s2271_s13 = scalar_lea.vmem %s2270_s10, 256 }
 0x68f   : > { %p2266_p11 = scmp.ne.s32.totalorder %s2941_s21, %s2265_s28  ;;  %p2272_p13 = scmp.lt.s32.totalorder %s2941_s21, %s2270_s10 }
 0x690   : > { %p2273_p2 = scmp.lt.s32.totalorder %s2271_s13, %s2265_s28 }
 0x691   : > { %p2267_p7 = pnand %p2266_p11, %p3043_p5 }
 0x692   : > { %p2274_p8 = por %p2273_p2, %p2272_p13 }
 0x693   : > { %v1318_v30 = vld [vmem:[#allocation7] sm:$0xff]  ;;  %p2268_p10 = pneg %p2267_p7 }
 0x694   : > { %v1324_v33 = vmul.f32 %v1322_v32, %v1318_v30 }
 0x695   : > { %p2275_p9 = pnand %p2274_p8, %p2268_p10 }
 0x696   : > { %v1325_v35 = vpack.c.bf16 %v1324_v33, %v1324_v33 }
 0x6f6   : > { %v1355_v34 = vpop.permute.xlu1 %1354 }
 0x6f7   : > { %v1364_v23 = vsel %vm766_vm4, %v1325_v35, %v1355_v34 }
 0x6fa   : > { %v1358_v21 = vpop.permute.xlu0 %1357 }
 0x6fb   : > { %v1367_v25 = vsel %vm1365_vm9, %v1364_v23, %v1358_v21 }
 0x6fe   : > { %v1361_v36 = vpop.permute.xlu1 %1360 }
 0x6ff   : > { %v1370_v37 = vsel %vm1368_vm10, %v1367_v25, %v1361_v36 }
 0x700   : > { %1935 = vmatmul.mubr.msk.bf16.vlgmr.msra.gmra.mrb[16].mxu1 %vm587_vm0, %v1370_v37 }
 0x701   : > { %1954 = vmatprep.mubr.msk.bf16.mxu1 %vm2363_vm1, %v2362_v8  ;;  %1947 = vmatpush3.bf16.msra.mxu1 %v2087_v51 }
 0x702   : > { %1948 = vmatprep.subr.bf16.mxu1 %v2362_v8 }
 0x705   : > { %1949 = vmatpush3.bf16.msra.mxu1 %v2088_v52 }
 0x706   : > { %1950 = vmatprep.subr.bf16.mxu1 %v2362_v8 }
 0x709   : > { %1951 = vmatpush3.bf16.msra.mxu1 %v2089_v5 }
 0x70a   : > { %1952 = vmatprep.subr.bf16.mxu1 %v2362_v8  ;;  %v1832_v8 = vld [vmem:[%s3041_s22] ss:$0 sm:$0xff] }
 0x70d   : > { %1953 = vmatpush3.bf16.msra.mxu1 %v2090_v6 }
 0x7d3   : > { %v1431_v39 = vpop.f32.mrb[16].mxu1 }
 0x7d4   : > { %v1432_v40 = vadd.f32 %v1822_v38, %v1431_v39  ;;  %v1936_v41 = vpop.f32.mrb[17].mxu1 }
 0x7d5   : > { %v1434_v42 = vpop.f32.mrb[18].mxu1 }
 0x7d6   : > { %v2898_v43 = vadd.f32 %v1432_v40, %v2704_v0  ;;  %v1937_v44 = vpop.f32.mrb[19].mxu1  ;;  %v2086_v0 = vld [vmem:[%s3038_s26 + $0x8] sm:$0xff]  }
 0x7d7   : > { %1941 = vmatpush3.bf16.msra.mxu0 %v2086_v0 }
 0x7d8   : > { %v1442_v45 = vsel %vm587_vm0, %v2898_v43, 0.0 }
 0x7d9   : > { %1443 = vadd.xlane.f32.xlu0 %v1442_v45 }
 0x866   : > { %v1444_v46 = vpop.xlane.xlu0 %1443 }
 0x867   : > { %v1446_v47 = vmul.f32 0.03125, %v1444_v46 }
 0x869   : > { %v1447_v48 = vsub.f32 %v2898_v43, %v1446_v47 }
 0x86b   : > { %v1448_v49 = vmul.f32 %v1447_v48, %v1447_v48 }
 0x86d   : > { %v1449_v31 = vsel %vm587_vm0, %v1448_v49, 0.0 }
 0x86e   : > { %1450 = vadd.xlane.f32.xlu1 %v1449_v31 }
 0x8fb   : > { %v1451_v53 = vpop.xlane.xlu1 %1450 }
 0x8fc   : > { %v1452_v54 = vmul.f32 0.032258064, %v1451_v53 }
 0x8fe   : > { %2119 = vrsqrt.f32 %v1452_v54  ;;  %vm1455_vm11 = vcmp.eq.f32.partialorder %v1452_v54, inf  ;;  %v1458_v57 = vand.u32 2147483648, %v1452_v54  ;;  %vm1457_vm12 = vcmp.eq.f32.partialorder %v1452_v54, 0.0 }
 0x908   : > { %v2120_v55 = vpop.eup %2119 }
 0x909   : > { %v1454_v56 = vmul.f32 %v2120_v55, %v1452_v54 }
 0x90b   : > { %v1456_v58 = vsel %vm1455_vm11, %v1452_v54, %v1454_v56 }
 0x90c   : > { %v1459_v59 = vsel %vm1457_vm12, %v1458_v57, %v1456_v58 }
 0x90d   : > { %v1460_v60 = vadd.f32 1e-06, %v1459_v59 }
 0x90f   : > { %2121 = vrcp.f32 %v1460_v60 }
 0x919   : > { %v2122_v61 = vpop.eup %2121 }
 0x91a   : > { %v1462_v63 = vmul.f32 %v2122_v61, %v1447_v48 }
 0x91c   : > { %v1469_v2 = vmul.f32 %v1826_v62, %v1462_v63 }
 0x91e   : > { %v1476_v3 = vadd.f32 %v1827_v1, %v1469_v2 }
 0x920   : > { %v1477_v4 = vpack.c.bf16 %v1476_v3, %v1476_v3 }
 0x922   : > { %1943 = vmatmul.mubr.msk.bf16.vlgmr.msra.gmra.mrb[20].mxu0 %vm587_vm0, %v1477_v4 }
 0x9f5   : > { %v1538_v9 = vpop.f32.mrb[20].mxu0 }
 0x9f6   : > { %v1539_v10 = vadd.f32 %v1828_v7, %v1538_v9  ;;  %v1944_v11 = vpop.f32.mrb[21].mxu0 }
 0x9f7   : > { %v1541_v12 = vpop.f32.mrb[22].mxu0 }
 0x9f8   : > { %v1544_v13 = vmax.f32 %v1539_v10, 0.0  ;;  %v1945_v14 = vpop.f32.mrb[23].mxu0 }
 0x9fa   : > { %v1545_v15 = vpack.c.bf16 %v1544_v13, %v1544_v13 }
 0x9fc   : > { %1955 = vmatmul.mubr.msk.bf16.vlgmr.msra.gmra.mrb[20].mxu1 %vm1585_vm13, %v1545_v15 }
 0xacf   : > { %v1623_v16 = vpop.f32.mrb[20].mxu1 }
 0xad0   : > { %v1624_v17 = vadd.f32 %v1832_v8, %v1623_v16  ;;  %v1956_v18 = vpop.f32.mrb[21].mxu1 }
 0xad1   : > { %v1626_v19 = vpop.f32.mrb[22].mxu1 }
 0xad2   : > { %v1629_v20 = vadd.f32 %v1624_v17, %v2898_v43  ;;  %v1957_v22 = vpop.f32.mrb[23].mxu1 }
 0xad4   : > { %1630 = vst.msk [vmem:[%s572_s7] sm:$0xff] %vm587_vm0, %v1629_v20 }
 0xad5   : > { %2278 = shalt.err (!%p2275_p9)
}
 0xad6   : > { %s2279_s8 = scalar_lea.hbm %s2939_s20, 128  ;;  %s2283_s7 = scalar_lea.hbm %s3042_s12, 256 }
 0xad7   : > { %p2280_p4 = scmp.ne.s32.totalorder %s2939_s20, %s2279_s8  ;;  %p2284_p1 = scmp.lt.u32.totalorder %s2939_s20, %s3042_s12 }
 0xad8   : > { %p2285_p12 = scmp.lt.u32.totalorder %s2283_s7, %s2279_s8  ;;  %p2287_p11 = scmp.lt.u32.totalorder %s2279_s8, %s2939_s20 }
 0xad9   : > { %p2281_p6 = pnand %p2280_p4, %p3043_p5 }
 0xada   : > { %p2286_p0 = por %p2285_p12, %p2284_p1 }
 0xadb   : > { %p2282_p3 = pneg %p2281_p6 }
 0xadc   : > { %p2288_p7 = por %p2287_p11, %p2286_p0 }
 0xade   : > { %p2289_p10 = pnand %p2288_p7, %p2282_p3 }
 0xae0   : > { %2292 = shalt.err (!%p2289_p10)
}
 0xae1   : > { %1976 = dma.vmem_to_hbm [thread:$0]  (%p3043_p5), %s2941_s21, 128, %s2939_s20, %s1632_s16  }
 0xae2 PF: > { %s1658_s28 = sand.u32 1, %s2335_s29   ;;  %p3044_p13 = scmp.ne.s32.totalorder %s3033_s5, 0 }
 0xae3   : > { %p3045_p2 = scmp.ge.s32.totalorder %s2355_s18, 2  ;;  %s1659_s24 = scalar_lea.sflag [#allocation10], %s1658_s28 }
 0xae5   : > { %p1996_p8 = pnand %p3045_p2, %p3044_p13 }
 0xae7   : > { %2330 = dma.done.wait (!%p1996_p8), %s1659_s24, 128  }
 0xae8   : > { %2332 = vsyncadd (!%p1996_p8), %s1659_s24, 4294967168  ;;  %s32_s18 = sadd.s32 1, %s2355_s18   ;;  %s3046_s29 = smov %s2339_s30 }
 0xae9   : > { %p29_p9 = scmp.ge.s32.totalorder %s32_s18, 4   ;;  %s3047_s30 = smov %s2343_s15 }
 0xaea   : > { %s3048_s15 = smov %s2631_s25  ;;  %s3049_s16 = smov %s2351_s17 }
 0xaeb   : > { %s3050_s17 = smov %s3052_s14  ;;  %31 = sbr.rel (!%p29_p9) target bundleno = 18 (0x12), region = 168 }
 0xaf2   :  { %1664 = vsyncpa [#allocation9], 1 }
 0xaf3   :  { %1666 = vsyncpa [#allocation9 + $0x1], 1 }
 0xaf4   :  { %1667 = vsyncpa [#allocation12], 1 }
 0xaf5   :  { %1668 = vsyncpa [#allocation15], 1 }
 0xaf6   :  { %1669 = vsyncpa [#allocation10], 1 }
 0xaf7   :  { %1671 = vsyncpa [#allocation10 + $0x1], 1 }

</bundles_post_ra>
